<compile_context>
chip_gen: v6e
topology: v6e:2x2x1
jax: 0.10.0
libtpu: 0.0.40
codegen_flags: <defaults>
</compile_context>

<pallas_src>
import functools

import jax
import jax.numpy as jnp
from jax.experimental import pallas as pl
from jax.experimental.pallas import tpu as pltpu

KSIZE = 4
STRIDE = 2
SLOPE = 0.2            # LeakyReLU negative slope
EPS = 1e-5             # BatchNorm eps
MAX_TILE_M = 4096      # lane-tile cap (amortizes per-step overhead, fits VMEM)
VMEM_LIMIT = 48 * 1024 * 1024   # scoped-VMEM budget, safe on v7x (64 MiB phys)


# ----------------------------------------------------------------------------
# small static helpers
# ----------------------------------------------------------------------------
def _round_up(x, m):
    return (x + m - 1) // m * m


def _pad2(a, rows, cols):
    return jnp.pad(a, ((0, rows - a.shape[0]), (0, cols - a.shape[1])))


def _im2col_cm(x_cm, k=KSIZE, s=STRIDE):
    """Channel-major (C,B,H,W) -> (K, M) patches with rows in (kh, kw, ci)
    order and cols in (b, oh, ow) order.  No transpose of the K x M tensor."""
    C, B, H, W = x_cm.shape
    OH = (H - k) // s + 1
    OW = (W - k) // s + 1
    cols = []
    for kh in range(k):
        for kw in range(k):
            cols.append(x_cm[:, :, kh:kh + s * OH:s, kw:kw + s * OW:s])
    p = jnp.stack(cols, axis=0).reshape(k * k * C, B * OH * OW)
    return p, OH, OW


def _weight_mat(w):
    """(Cout, Cin, KH, KW) -> (Cout, KH*KW*Cin) matching (kh, kw, ci) rows."""
    return w.transpose(0, 2, 3, 1).reshape(w.shape[0], -1)


def _affine_rows(affine, cin, kk, k_pad):
    """Per-channel (scale, shift) -> per-patch-row vectors, zero padded.
    Row r maps to channel r % cin, hence jnp.tile."""
    scale, shift = affine
    sc = jnp.pad(jnp.tile(scale, kk), (0, k_pad - cin * kk))
    sh = jnp.pad(jnp.tile(shift, kk), (0, k_pad - cin * kk))
    return (sc.reshape(k_pad, 1).astype(jnp.float32),
            sh.reshape(k_pad, 1).astype(jnp.float32))


def _bn_affine(ssum, ssq, gamma, beta, count):
    """Fold batch mean/var (biased) + gamma/beta into a single scale/shift."""
    mean = ssum / count
    var = jnp.maximum(ssq / count - mean * mean, 0.0)   # guard cancellation
    scale = gamma * jax.lax.rsqrt(var + EPS)
    shift = beta - mean * scale
    return scale, shift


# ----------------------------------------------------------------------------
# Pallas kernels
# ----------------------------------------------------------------------------
def _conv_bn_stats_kernel(*refs, m_valid, tile_m, n_m_per, n_cores,
                          apply_in_act, need_mask):
    """Fused: [prev BN affine + LeakyReLU on patches] -> conv matmul ->
    bf16 z tile write + global sum / sum-of-squares accumulation (masked only
    on the last M tile when padded)."""
    if apply_in_act:
        w_ref, p_ref, isc_ref, ish_ref, z_ref, sum_ref, ssq_ref = refs
    else:
        w_ref, p_ref, z_ref, sum_ref, ssq_ref = refs

    c_idx = pl.program_id(0)   # core-split axis (parallel)
    m_idx = pl.program_id(1)   # M-tile axis (arbitrary: running reduction)

    @pl.when(m_idx == 0)
    def _init():
        sum_ref[...] = jnp.zeros_like(sum_ref)
        ssq_ref[...] = jnp.zeros_like(ssq_ref)

    p = p_ref[...]
    if apply_in_act:
        # Previous block's BatchNorm affine + LeakyReLU, applied per patch row
        # (each patch row maps statically to one input channel).
        a = p.astype(jnp.float32) * isc_ref[...] + ish_ref[...]
        a = jnp.where(a > 0, a, SLOPE * a)
        p = a.astype(jnp.bfloat16)

    # Lane-dense conv-as-matmul: (Cout_pad, K_pad) @ (K_pad, TILE_M), f32 acc.
    z = jnp.dot(w_ref[...], p, preferred_element_type=jnp.float32)
    z_ref[...] = z.astype(z_ref.dtype)      # bf16 interlayer writeback

    def _acc(zz):
        sum_ref[...] += jnp.sum(zz, axis=1, keepdims=True)
        ssq_ref[...] += jnp.sum(zz * zz, axis=1, keepdims=True)

    if not need_mask:
        # Either no M padding, or padded patch columns are exact zeros
        # (block 1), so they contribute nothing to the statistics.
        _acc(z)
    else:
        is_last = jnp.logical_and(c_idx == n_cores - 1, m_idx == n_m_per - 1)

        @pl.when(jnp.logical_not(is_last))
        def _plain():
            _acc(z)

        @pl.when(is_last)
        def _masked():
            col = (jax.lax.broadcasted_iota(jnp.int32, z.shape, 1)
                   + (c_idx * n_m_per + m_idx) * tile_m)
            _acc(jnp.where(col < m_valid, z, 0.0))


def _conv_bias_kernel(w_ref, p_ref, isc_ref, ish_ref, b_ref, o_ref):
    """Final layer: [prev BN affine + LeakyReLU] -> conv matmul -> + bias."""
    a = p_ref[...].astype(jnp.float32) * isc_ref[...] + ish_ref[...]
    a = jnp.where(a > 0, a, SLOPE * a)
    z = jnp.dot(w_ref[...], a.astype(jnp.bfloat16),
                preferred_element_type=jnp.float32)
    o_ref[...] = z + b_ref[...]


# ----------------------------------------------------------------------------
# per-layer pallas_call wrappers
# ----------------------------------------------------------------------------
def _conv_bn_stats(patches, w, in_affine):
    cout, cin, kh, kw = w.shape
    K, M = patches.shape
    k_pad = _round_up(K, 16)               # bf16 sublane granularity (was 128)
    cout_pad = _round_up(cout, 16)
    tile_m = min(_round_up(M, 128), MAX_TILE_M)
    m_pad = _round_up(M, tile_m)
    n_m_total = m_pad // tile_m
    # v7x: split the stats reduction over the 2 TensorCores whenever the tile
    # count splits evenly (no extra padding); degenerates to 1 on v5e/v6e.
    n_cores = 2 if (n_m_total >= 2 and n_m_total % 2 == 0) else 1
    n_m_per = n_m_total // n_cores

    w_pad = _pad2(_weight_mat(w), cout_pad, k_pad).astype(jnp.bfloat16)
    p_pad = _pad2(patches, k_pad, m_pad).astype(jnp.bfloat16)

    apply_in_act = in_affine is not None
    # Block 1 (no input affine): zero-padded patch columns give exact-zero z,
    # so no mask is ever needed; otherwise only the last tile needs masking.
    need_mask = apply_in_act and (m_pad != M)

    args = [w_pad, p_pad]
    in_specs = [
        pl.BlockSpec((cout_pad, k_pad), lambda c, m: (0, 0)),            # weights
        pl.BlockSpec((k_pad, tile_m), lambda c, m: (0, c * n_m_per + m)),  # patches
    ]
    if apply_in_act:
        isc, ish = _affine_rows(in_affine, cin, kh * kw, k_pad)
        args += [isc, ish]
        in_specs += [pl.BlockSpec((k_pad, 1), lambda c, m: (0, 0)),
                     pl.BlockSpec((k_pad, 1), lambda c, m: (0, 0))]

    z_pad, ssum, ssq = pl.pallas_call(
        functools.partial(_conv_bn_stats_kernel, m_valid=M, tile_m=tile_m,
                          n_m_per=n_m_per, n_cores=n_cores,
                          apply_in_act=apply_in_act, need_mask=need_mask),
        out_shape=(jax.ShapeDtypeStruct((cout_pad, m_pad), jnp.bfloat16),
                   jax.ShapeDtypeStruct((n_cores, cout_pad, 1), jnp.float32),
                   jax.ShapeDtypeStruct((n_cores, cout_pad, 1), jnp.float32)),
        grid=(n_cores, n_m_per),
        in_specs=in_specs,
        out_specs=(
            pl.BlockSpec((cout_pad, tile_m), lambda c, m: (0, c * n_m_per + m)),
            pl.BlockSpec((None, cout_pad, 1), lambda c, m: (c, 0, 0)),
            pl.BlockSpec((None, cout_pad, 1), lambda c, m: (c, 0, 0)),
        ),
        compiler_params=pltpu.CompilerParams(
            dimension_semantics=("parallel", "arbitrary"),
            vmem_limit_bytes=VMEM_LIMIT),
    )(*args)
    return (z_pad[:cout, :M],
            jnp.sum(ssum, axis=0)[:cout, 0],
            jnp.sum(ssq, axis=0)[:cout, 0])


def _conv_final(patches, w, bias, in_affine):
    cout, cin, kh, kw = w.shape
    K, M = patches.shape
    k_pad = _round_up(K, 16)
    cout_pad = _round_up(cout, 16)
    tile_m = min(_round_up(M, 128), MAX_TILE_M)
    m_pad = _round_up(M, tile_m)
    n_m = m_pad // tile_m

    w_pad = _pad2(_weight_mat(w), cout_pad, k_pad).astype(jnp.bfloat16)
    p_pad = _pad2(patches, k_pad, m_pad).astype(jnp.bfloat16)
    b_pad = jnp.pad(bias, (0, cout_pad - cout)).reshape(cout_pad, 1)
    b_pad = b_pad.astype(jnp.float32)
    isc, ish = _affine_rows(in_affine, cin, kh * kw, k_pad)

    out_pad = pl.pallas_call(
        _conv_bias_kernel,
        out_shape=jax.ShapeDtypeStruct((cout_pad, m_pad), jnp.float32),
        grid=(n_m,),
        in_specs=[pl.BlockSpec((cout_pad, k_pad), lambda m: (0, 0)),
                  pl.BlockSpec((k_pad, tile_m), lambda m: (0, m)),
                  pl.BlockSpec((k_pad, 1), lambda m: (0, 0)),
                  pl.BlockSpec((k_pad, 1), lambda m: (0, 0)),
                  pl.BlockSpec((cout_pad, 1), lambda m: (0, 0))],
        out_specs=pl.BlockSpec((cout_pad, tile_m), lambda m: (0, m)),
        compiler_params=pltpu.CompilerParams(
            dimension_semantics=("parallel",),       # independent M tiles
            vmem_limit_bytes=VMEM_LIMIT),
    )(w_pad, p_pad, isc, ish, b_pad)
    return out_pad[:cout, :M]


# ----------------------------------------------------------------------------
# full forward pass
# ----------------------------------------------------------------------------
def discriminator_forward(params, x):
    """x: (B, C, H, W) float32 NCHW. Returns (B, Cout*OH3*OW3) logits."""
    B = x.shape[0]

    # block 1: Conv(C->16). Its BN + LeakyReLU are folded into block 2's
    # kernel.  Only the tiny input is transposed to channel-major.
    p1, oh1, ow1 = _im2col_cm(jnp.transpose(x, (1, 0, 2, 3)))
    z1, s1, q1 = _conv_bn_stats(p1, params["w1"], in_affine=None)
    c1 = params["w1"].shape[0]
    sc1, sh1 = _bn_affine(s1, q1, params["g1"], params["b1"], B * oh1 * ow1)

    # block 2: Conv(16->32).  z1 is already channel-major (C, B, H, W): no
    # transpose before im2col.  Its BN + LeakyReLU fold into block 3's kernel.
    p2, oh2, ow2 = _im2col_cm(z1.reshape(c1, B, oh1, ow1))
    z2, s2, q2 = _conv_bn_stats(p2, params["w2"], in_affine=(sc1, sh1))
    c2 = params["w2"].shape[0]
    sc2, sh2 = _bn_affine(s2, q2, params["g2"], params["b2"], B * oh2 * ow2)

    # block 3: final Conv(32->1) with bias, no BN / activation.
    p3, oh3, ow3 = _im2col_cm(z2.reshape(c2, B, oh2, ow2))
    z3 = _conv_final(p3, params["w3"], params["bias3"], in_affine=(sc2, sh2))
    c3 = params["w3"].shape[0]

    # lane-dense (Cout, B*OH*OW) -> NCHW -> .view(B, -1), matching PyTorch.
    return z3.reshape(c3, B, oh3, ow3).transpose(1, 0, 2, 3).reshape(B, -1)


# ----------------------------------------------------------------------------
# pure-JAX reference (includes the conv biases that BN cancels exactly)
# ----------------------------------------------------------------------------
def _reference_forward(params, x):
    def conv(h, w):
        return jax.lax.conv_general_dilated(
            h, w, (STRIDE, STRIDE), "VALID",
            dimension_numbers=("NCHW", "OIHW", "NCHW"))

    def block(h, w, b, g, bt):
        z = conv(h, w) + b.reshape(1, -1, 1, 1)
        mean = jnp.mean(z, axis=(0, 2, 3), keepdims=True)
        var = jnp.mean((z - mean) ** 2, axis=(0, 2, 3), keepdims=True)
        z = (z - mean) * jax.lax.rsqrt(var + EPS)
        z = z * g.reshape(1, -1, 1, 1) + bt.reshape(1, -1, 1, 1)
        return jnp.where(z > 0, z, SLOPE * z)

    h = block(x, params["w1"], params["bias1"], params["g1"], params["b1"])
    h = block(h, params["w2"], params["bias2"], params["g2"], params["b2"])
    z = conv(h, params["w3"]) + params["bias3"].reshape(1, -1, 1, 1)
    return z.reshape(z.shape[0], -1)


# ----------------------------------------------------------------------------
# main
# ----------------------------------------------------------------------------
if __name__ == "__main__":
    key = jax.random.PRNGKey(0)
    B, C, H, W = 2, 1, 28, 28          # MNIST-like DCGAN discriminator input
    hidden = 16
    keys = jax.random.split(key, 4)
    x = jax.random.normal(keys[0], (B, C, H, W), jnp.float32)

    def conv_init(k, cout, cin):
        fan_in = cin * KSIZE * KSIZE
        bound = 1.0 / (fan_in ** 0.5)
        kw_, kb_ = jax.random.split(k)
        w = jax.random.uniform(kw_, (cout, cin, KSIZE, KSIZE), jnp.float32,
                               -bound, bound)
        b = jax.random.uniform(kb_, (cout,), jnp.float32, -bound, bound)
        return w, b

    w1, bias1 = conv_init(keys[1], hidden, C)
    w2, bias2 = conv_init(keys[2], hidden * 2, hidden)
    w3, bias3 = conv_init(keys[3], 1, hidden * 2)

    params = dict(
        # bias1/bias2 are only used by the reference: BN's mean subtraction
        # cancels them exactly, so the Pallas path drops the dead bias add.
        w1=w1, bias1=bias1,
        g1=jnp.ones((hidden,), jnp.float32), b1=jnp.zeros((hidden,), jnp.float32),
        w2=w2, bias2=bias2,
        g2=jnp.ones((hidden * 2,), jnp.float32), b2=jnp.zeros((hidden * 2,), jnp.float32),
        w3=w3, bias3=bias3,
    )

    fwd = jax.jit(discriminator_forward)
    out = jax.block_until_ready(fwd(params, x))

    assert out.shape == (B, 1), out.shape
    assert bool(jnp.all(jnp.isfinite(out)))

    ref = jax.jit(_reference_forward)(params, x)
    assert bool(jnp.allclose(out, ref, rtol=5e-2, atol=5e-2)), (
        "mismatch vs reference: max abs err "
        f"{float(jnp.max(jnp.abs(out - ref)))}")

    print("KERNEL_OK")
</pallas_src>

<mosaic_0001>
module attributes {stable_mosaic.version = 11 : i64} {
  func.func @_conv_bn_stats_kernel(%arg0: i32, %arg1: i32, %arg2: memref<16x16xbf16, #tpu.memory_space<vmem>>, %arg3: memref<16x384xbf16, #tpu.memory_space<vmem>>, %arg4: memref<16x384xbf16, #tpu.memory_space<vmem>>, %arg5: memref<1x16x1xf32, #tpu.memory_space<vmem>>, %arg6: memref<1x16x1xf32, #tpu.memory_space<vmem>>) attributes {dimension_semantics = [#tpu.dimension_semantics<parallel>, #tpu.dimension_semantics<arbitrary>], iteration_bounds = array<i64: 1, 1>, scalar_prefetch = 0 : i64, scratch_operands = 0 : i64, tpu.core_type = #tpu.core_type<tc>, window_params = [{pipeline_mode = #tpu.pipeline_mode<synchronous>, transform_indices = @transform_0, window_bounds = array<i64: 16, 16>}, {transform_indices = @transform_1, window_bounds = array<i64: 16, 384>}, {transform_indices = @transform_2, window_bounds = array<i64: 16, 384>}, {transform_indices = @transform_3, window_bounds = array<i64: 1, 16, 1>}, {transform_indices = @transform_4, window_bounds = array<i64: 1, 16, 1>}]} {
    %c0_i32 = arith.constant 0 : i32
    %0 = arith.cmpi eq, %arg1, %c0_i32 : i32
    %1 = arith.extui %0 : i1 to i32
    %c0_i32_0 = arith.constant 0 : i32
    %2 = arith.cmpi ne, %1, %c0_i32_0 : i32
    scf.if %2 {
      %cst_20 = arith.constant 0.000000e+00 : f32
      %25 = vector.broadcast %cst_20 : f32 to vector<16x1xf32>
      %c0_21 = arith.constant 0 : index
      %c0_22 = arith.constant 0 : index
      %c0_23 = arith.constant 0 : index
      %26 = vector.load %arg5[%c0_21, %c0_22, %c0_23] : memref<1x16x1xf32, #tpu.memory_space<vmem>>, vector<1x16x1xf32>
      %27 = vector.shape_cast %26 : vector<1x16x1xf32> to vector<16x1xf32>
      %28 = vector.shape_cast %25 : vector<16x1xf32> to vector<1x16x1xf32>
      tpu.vector_store %arg5[%c0_21, %c0_22, %c0_23], %28 {strides = array<i32>} : memref<1x16x1xf32, #tpu.memory_space<vmem>>, vector<1x16x1xf32>,
      %cst_24 = arith.constant 0.000000e+00 : f32
      %29 = vector.broadcast %cst_24 : f32 to vector<16x1xf32>
      %c0_25 = arith.constant 0 : index
      %c0_26 = arith.constant 0 : index
      %c0_27 = arith.constant 0 : index
      %30 = vector.load %arg6[%c0_25, %c0_26, %c0_27] : memref<1x16x1xf32, #tpu.memory_space<vmem>>, vector<1x16x1xf32>
      %31 = vector.shape_cast %30 : vector<1x16x1xf32> to vector<16x1xf32>
      %32 = vector.shape_cast %29 : vector<16x1xf32> to vector<1x16x1xf32>
      tpu.vector_store %arg6[%c0_25, %c0_26, %c0_27], %32 {strides = array<i32>} : memref<1x16x1xf32, #tpu.memory_space<vmem>>, vector<1x16x1xf32>,
    } else {
    }
    %c0 = arith.constant 0 : index
    %c0_1 = arith.constant 0 : index
    %3 = vector.load %arg3[%c0, %c0_1] : memref<16x384xbf16, #tpu.memory_space<vmem>>, vector<16x384xbf16>
    %c0_2 = arith.constant 0 : index
    %c0_3 = arith.constant 0 : index
    %4 = vector.load %arg2[%c0_2, %c0_3] : memref<16x16xbf16, #tpu.memory_space<vmem>>, vector<16x16xbf16>
    %cst = arith.constant dense<0.000000e+00> : vector<16x384xf32>
    %5 = tpu.matmul %4, %3, %cst {dimension_numbers = #tpu.dot_dimension_numbers<[1], [0], [0], [1], [0, 0, 1, 1], [], []>} : vector<16x16xbf16>, vector<16x384xbf16>, vector<16x384xf32> -> vector<16x384xf32>
    %6 = arith.truncf %5 : vector<16x384xf32> to vector<16x384xbf16>
    %c0_4 = arith.constant 0 : index
    %c0_5 = arith.constant 0 : index
    %7 = vector.load %arg4[%c0_4, %c0_5] : memref<16x384xbf16, #tpu.memory_space<vmem>>, vector<16x384xbf16>
    tpu.vector_store %arg4[%c0_4, %c0_5], %6 {strides = array<i32>} : memref<16x384xbf16, #tpu.memory_space<vmem>>, vector<16x384xbf16>,
    %c0_6 = arith.constant 0 : index
    %c0_7 = arith.constant 0 : index
    %c0_8 = arith.constant 0 : index
    %8 = vector.load %arg5[%c0_6, %c0_7, %c0_8] : memref<1x16x1xf32, #tpu.memory_space<vmem>>, vector<1x16x1xf32>
    %9 = vector.shape_cast %8 : vector<1x16x1xf32> to vector<16x1xf32>
    %cst_9 = arith.constant dense<0.000000e+00> : vector<16xf32>
    %10 = vector.multi_reduction <add>, %5, %cst_9 [1] : vector<16x384xf32> to vector<16xf32>
    %11 = vector.shape_cast %10 : vector<16xf32> to vector<16x1xf32>
    %12 = arith.addf %9, %11 : vector<16x1xf32>
    %c0_10 = arith.constant 0 : index
    %c0_11 = arith.constant 0 : index
    %c0_12 = arith.constant 0 : index
    %13 = vector.load %arg5[%c0_10, %c0_11, %c0_12] : memref<1x16x1xf32, #tpu.memory_space<vmem>>, vector<1x16x1xf32>
    %14 = vector.shape_cast %13 : vector<1x16x1xf32> to vector<16x1xf32>
    %15 = vector.shape_cast %12 : vector<16x1xf32> to vector<1x16x1xf32>
    tpu.vector_store %arg5[%c0_10, %c0_11, %c0_12], %15 {strides = array<i32>} : memref<1x16x1xf32, #tpu.memory_space<vmem>>, vector<1x16x1xf32>,
    %c0_13 = arith.constant 0 : index
    %c0_14 = arith.constant 0 : index
    %c0_15 = arith.constant 0 : index
    %16 = vector.load %arg6[%c0_13, %c0_14, %c0_15] : memref<1x16x1xf32, #tpu.memory_space<vmem>>, vector<1x16x1xf32>
    %17 = vector.shape_cast %16 : vector<1x16x1xf32> to vector<16x1xf32>
    %18 = arith.mulf %5, %5 : vector<16x384xf32>
    %cst_16 = arith.constant dense<0.000000e+00> : vector<16xf32>
    %19 = vector.multi_reduction <add>, %18, %cst_16 [1] : vector<16x384xf32> to vector<16xf32>
    %20 = vector.shape_cast %19 : vector<16xf32> to vector<16x1xf32>
    %21 = arith.addf %17, %20 : vector<16x1xf32>
    %c0_17 = arith.constant 0 : index
    %c0_18 = arith.constant 0 : index
    %c0_19 = arith.constant 0 : index
    %22 = vector.load %arg6[%c0_17, %c0_18, %c0_19] : memref<1x16x1xf32, #tpu.memory_space<vmem>>, vector<1x16x1xf32>
    %23 = vector.shape_cast %22 : vector<1x16x1xf32> to vector<16x1xf32>
    %24 = vector.shape_cast %21 : vector<16x1xf32> to vector<1x16x1xf32>
    tpu.vector_store %arg6[%c0_17, %c0_18, %c0_19], %24 {strides = array<i32>} : memref<1x16x1xf32, #tpu.memory_space<vmem>>, vector<1x16x1xf32>,
    return
  }
  func.func @transform_0(%arg0: i32, %arg1: i32) -> (i32, i32) {
    %c0_i32 = arith.constant 0 : i32
    %c0_i32_0 = arith.constant 0 : i32
    %c0_i32_1 = arith.constant 0 : i32
    return %c0_i32, %c0_i32_0 : i32, i32
  }
  func.func @transform_1(%arg0: i32, %arg1: i32) -> (i32, i32) {
    %c1_i32 = arith.constant 1 : i32
    %0 = arith.muli %arg0, %c1_i32 : i32
    %1 = arith.addi %0, %arg1 : i32
    %c0_i32 = arith.constant 0 : i32
    %c0_i32_0 = arith.constant 0 : i32
    return %c0_i32, %1 : i32, i32
  }
  func.func @transform_2(%arg0: i32, %arg1: i32) -> (i32, i32) {
    %c1_i32 = arith.constant 1 : i32
    %0 = arith.muli %arg0, %c1_i32 : i32
    %1 = arith.addi %0, %arg1 : i32
    %c0_i32 = arith.constant 0 : i32
    %c0_i32_0 = arith.constant 0 : i32
    return %c0_i32, %1 : i32, i32
  }
  func.func @transform_3(%arg0: i32, %arg1: i32) -> (i32, i32, i32) {
    %c0_i32 = arith.constant 0 : i32
    %c0_i32_0 = arith.constant 0 : i32
    %c0_i32_1 = arith.constant 0 : i32
    return %arg0, %c0_i32, %c0_i32_0 : i32, i32, i32
  }
  func.func @transform_4(%arg0: i32, %arg1: i32) -> (i32, i32, i32) {
    %c0_i32 = arith.constant 0 : i32
    %c0_i32_0 = arith.constant 0 : i32
    %c0_i32_1 = arith.constant 0 : i32
    return %arg0, %c0_i32, %c0_i32_0 : i32, i32, i32
  }
}

module attributes {stable_mosaic.version = 11 : i64} {
  func.func @_conv_bn_stats_kernel(%arg0: i32, %arg1: i32, %arg2: memref<32x256xbf16, #tpu.memory_space<vmem>>, %arg3: memref<256x128xbf16, #tpu.memory_space<vmem>>, %arg4: memref<256x1xf32, #tpu.memory_space<vmem>>, %arg5: memref<256x1xf32, #tpu.memory_space<vmem>>, %arg6: memref<32x128xbf16, #tpu.memory_space<vmem>>, %arg7: memref<1x32x1xf32, #tpu.memory_space<vmem>>, %arg8: memref<1x32x1xf32, #tpu.memory_space<vmem>>) attributes {dimension_semantics = [#tpu.dimension_semantics<parallel>, #tpu.dimension_semantics<arbitrary>], iteration_bounds = array<i64: 1, 1>, scalar_prefetch = 0 : i64, scratch_operands = 0 : i64, tpu.core_type = #tpu.core_type<tc>, window_params = [{pipeline_mode = #tpu.pipeline_mode<synchronous>, transform_indices = @transform_0, window_bounds = array<i64: 32, 256>}, {transform_indices = @transform_1, window_bounds = array<i64: 256, 128>}, {pipeline_mode = #tpu.pipeline_mode<synchronous>, transform_indices = @transform_2, window_bounds = array<i64: 256, 1>}, {pipeline_mode = #tpu.pipeline_mode<synchronous>, transform_indices = @transform_3, window_bounds = array<i64: 256, 1>}, {transform_indices = @transform_4, window_bounds = array<i64: 32, 128>}, {transform_indices = @transform_5, window_bounds = array<i64: 1, 32, 1>}, {transform_indices = @transform_6, window_bounds = array<i64: 1, 32, 1>}]} {
    %c0_i32 = arith.constant 0 : i32
    %0 = arith.cmpi eq, %arg1, %c0_i32 : i32
    %1 = arith.extui %0 : i1 to i32
    %c0_i32_0 = arith.constant 0 : i32
    %2 = arith.cmpi ne, %1, %c0_i32_0 : i32
    scf.if %2 {
      %cst_16 = arith.constant 0.000000e+00 : f32
      %29 = vector.broadcast %cst_16 : f32 to vector<32x1xf32>
      %c0_17 = arith.constant 0 : index
      %c0_18 = arith.constant 0 : index
      %c0_19 = arith.constant 0 : index
      %30 = vector.load %arg7[%c0_17, %c0_18, %c0_19] : memref<1x32x1xf32, #tpu.memory_space<vmem>>, vector<1x32x1xf32>
      %31 = vector.shape_cast %30 : vector<1x32x1xf32> to vector<32x1xf32>
      %32 = vector.shape_cast %29 : vector<32x1xf32> to vector<1x32x1xf32>
      tpu.vector_store %arg7[%c0_17, %c0_18, %c0_19], %32 {strides = array<i32>} : memref<1x32x1xf32, #tpu.memory_space<vmem>>, vector<1x32x1xf32>,
      %cst_20 = arith.constant 0.000000e+00 : f32
      %33 = vector.broadcast %cst_20 : f32 to vector<32x1xf32>
      %c0_21 = arith.constant 0 : index
      %c0_22 = arith.constant 0 : index
      %c0_23 = arith.constant 0 : index
      %34 = vector.load %arg8[%c0_21, %c0_22, %c0_23] : memref<1x32x1xf32, #tpu.memory_space<vmem>>, vector<1x32x1xf32>
      %35 = vector.shape_cast %34 : vector<1x32x1xf32> to vector<32x1xf32>
      %36 = vector.shape_cast %33 : vector<32x1xf32> to vector<1x32x1xf32>
      tpu.vector_store %arg8[%c0_21, %c0_22, %c0_23], %36 {strides = array<i32>} : memref<1x32x1xf32, #tpu.memory_space<vmem>>, vector<1x32x1xf32>,
    } else {
    }
    %c0 = arith.constant 0 : index
    %c0_1 = arith.constant 0 : index
    %3 = vector.load %arg3[%c0, %c0_1] : memref<256x128xbf16, #tpu.memory_space<vmem>>, vector<256x128xbf16>
    %4 = arith.extf %3 : vector<256x128xbf16> to vector<256x128xf32>
    %c0_2 = arith.constant 0 : index
    %c0_3 = arith.constant 0 : index
    %5 = vector.load %arg4[%c0_2, %c0_3] : memref<256x1xf32, #tpu.memory_space<vmem>>, vector<256x1xf32>
    %6 = vector.broadcast %5 : vector<256x1xf32> to vector<256x128xf32>
    %7 = arith.mulf %4, %6 : vector<256x128xf32>
    %c0_4 = arith.constant 0 : index
    %c0_5 = arith.constant 0 : index
    %8 = vector.load %arg5[%c0_4, %c0_5] : memref<256x1xf32, #tpu.memory_space<vmem>>, vector<256x1xf32>
    %9 = vector.broadcast %8 : vector<256x1xf32> to vector<256x128xf32>
    %10 = arith.addf %7, %9 : vector<256x128xf32>
    %cst = arith.constant 0.000000e+00 : f32
    %11 = vector.broadcast %cst : f32 to vector<256x128xf32>
    %12 = arith.cmpf ogt, %10, %11 : vector<256x128xf32>
    %cst_6 = arith.constant 2.000000e-01 : f32
    %13 = vector.broadcast %cst_6 : f32 to vector<256x128xf32>
    %14 = arith.mulf %13, %10 : vector<256x128xf32>
    %15 = arith.select %12, %10, %14 : vector<256x128xi1>, vector<256x128xf32>
    %16 = arith.truncf %15 : vector<256x128xf32> to vector<256x128xbf16>
    %c0_7 = arith.constant 0 : index
    %c0_8 = arith.constant 0 : index
    %17 = vector.load %arg2[%c0_7, %c0_8] : memref<32x256xbf16, #tpu.memory_space<vmem>>, vector<32x256xbf16>
    %cst_9 = arith.constant dense<0.000000e+00> : vector<32x128xf32>
    %18 = tpu.matmul %17, %16, %cst_9 {dimension_numbers = #tpu.dot_dimension_numbers<[1], [0], [0], [1], [0, 0, 1, 1], [], []>} : vector<32x256xbf16>, vector<256x128xbf16>, vector<32x128xf32> -> vector<32x128xf32>
    %19 = arith.truncf %18 : vector<32x128xf32> to vector<32x128xbf16>
    %c0_10 = arith.constant 0 : index
    %c0_11 = arith.constant 0 : index
    %20 = vector.load %arg6[%c0_10, %c0_11] : memref<32x128xbf16, #tpu.memory_space<vmem>>, vector<32x128xbf16>
    tpu.vector_store %arg6[%c0_10, %c0_11], %19 {strides = array<i32>} : memref<32x128xbf16, #tpu.memory_space<vmem>>, vector<32x128xbf16>,
    %c0_i32_12 = arith.constant 0 : i32
    %21 = arith.cmpi eq, %arg0, %c0_i32_12 : i32
    %c0_i32_13 = arith.constant 0 : i32
    %22 = arith.cmpi eq, %arg1, %c0_i32_13 : i32
    %23 = arith.andi %21, %22 : i1
    %true = arith.constant true
    %24 = arith.xori %23, %true : i1
    %25 = arith.extui %24 : i1 to i32
    %c0_i32_14 = arith.constant 0 : i32
    %26 = arith.cmpi ne, %25, %c0_i32_14 : i32
    scf.if %26 {
      %c0_16 = arith.constant 0 : index
      %c0_17 = arith.constant 0 : index
      %c0_18 = arith.constant 0 : index
      %29 = vector.load %arg7[%c0_16, %c0_17, %c0_18] : memref<1x32x1xf32, #tpu.memory_space<vmem>>, vector<1x32x1xf32>
      %30 = vector.shape_cast %29 : vector<1x32x1xf32> to vector<32x1xf32>
      %cst_19 = arith.constant dense<0.000000e+00> : vector<32xf32>
      %31 = vector.multi_reduction <add>, %18, %cst_19 [1] : vector<32x128xf32> to vector<32xf32>
      %32 = vector.shape_cast %31 : vector<32xf32> to vector<32x1xf32>
      %33 = arith.addf %30, %32 : vector<32x1xf32>
      %c0_20 = arith.constant 0 : index
      %c0_21 = arith.constant 0 : index
      %c0_22 = arith.constant 0 : index
      %34 = vector.load %arg7[%c0_20, %c0_21, %c0_22] : memref<1x32x1xf32, #tpu.memory_space<vmem>>, vector<1x32x1xf32>
      %35 = vector.shape_cast %34 : vector<1x32x1xf32> to vector<32x1xf32>
      %36 = vector.shape_cast %33 : vector<32x1xf32> to vector<1x32x1xf32>
      tpu.vector_store %arg7[%c0_20, %c0_21, %c0_22], %36 {strides = array<i32>} : memref<1x32x1xf32, #tpu.memory_space<vmem>>, vector<1x32x1xf32>,
      %c0_23 = arith.constant 0 : index
      %c0_24 = arith.constant 0 : index
      %c0_25 = arith.constant 0 : index
      %37 = vector.load %arg8[%c0_23, %c0_24, %c0_25] : memref<1x32x1xf32, #tpu.memory_space<vmem>>, vector<1x32x1xf32>
      %38 = vector.shape_cast %37 : vector<1x32x1xf32> to vector<32x1xf32>
      %39 = arith.mulf %18, %18 : vector<32x128xf32>
      %cst_26 = arith.constant dense<0.000000e+00> : vector<32xf32>
      %40 = vector.multi_reduction <add>, %39, %cst_26 [1] : vector<32x128xf32> to vector<32xf32>
      %41 = vector.shape_cast %40 : vector<32xf32> to vector<32x1xf32>
      %42 = arith.addf %38, %41 : vector<32x1xf32>
      %c0_27 = arith.constant 0 : index
      %c0_28 = arith.constant 0 : index
      %c0_29 = arith.constant 0 : index
      %43 = vector.load %arg8[%c0_27, %c0_28, %c0_29] : memref<1x32x1xf32, #tpu.memory_space<vmem>>, vector<1x32x1xf32>
      %44 = vector.shape_cast %43 : vector<1x32x1xf32> to vector<32x1xf32>
      %45 = vector.shape_cast %42 : vector<32x1xf32> to vector<1x32x1xf32>
      tpu.vector_store %arg8[%c0_27, %c0_28, %c0_29], %45 {strides = array<i32>} : memref<1x32x1xf32, #tpu.memory_space<vmem>>, vector<1x32x1xf32>,
    } else {
    }
    %27 = arith.extui %23 : i1 to i32
    %c0_i32_15 = arith.constant 0 : i32
    %28 = arith.cmpi ne, %27, %c0_i32_15 : i32
    scf.if %28 {
      %29 = tpu.iota {dimensions = array<i32: 1>} : vector<32x128xi32>
      %c1_i32 = arith.constant 1 : i32
      %30 = arith.muli %arg0, %c1_i32 : i32
      %31 = arith.addi %30, %arg1 : i32
      %c128_i32 = arith.constant 128 : i32
      %32 = arith.muli %31, %c128_i32 : i32
      %33 = vector.broadcast %32 : i32 to vector<32x128xi32>
      %34 = arith.addi %29, %33 : vector<32x128xi32>
      %c50_i32 = arith.constant 50 : i32
      %35 = vector.broadcast %c50_i32 : i32 to vector<32x128xi32>
      %36 = arith.cmpi slt, %34, %35 : vector<32x128xi32>
      %cst_16 = arith.constant 0.000000e+00 : f32
      %37 = vector.broadcast %cst_16 : f32 to vector<32x128xf32>
      %38 = arith.select %36, %18, %37 : vector<32x128xi1>, vector<32x128xf32>
      %c0_17 = arith.constant 0 : index
      %c0_18 = arith.constant 0 : index
      %c0_19 = arith.constant 0 : index
      %39 = vector.load %arg7[%c0_17, %c0_18, %c0_19] : memref<1x32x1xf32, #tpu.memory_space<vmem>>, vector<1x32x1xf32>
      %40 = vector.shape_cast %39 : vector<1x32x1xf32> to vector<32x1xf32>
      %cst_20 = arith.constant dense<0.000000e+00> : vector<32xf32>
      %41 = vector.multi_reduction <add>, %38, %cst_20 [1] : vector<32x128xf32> to vector<32xf32>
      %42 = vector.shape_cast %41 : vector<32xf32> to vector<32x1xf32>
      %43 = arith.addf %40, %42 : vector<32x1xf32>
      %c0_21 = arith.constant 0 : index
      %c0_22 = arith.constant 0 : index
      %c0_23 = arith.constant 0 : index
      %44 = vector.load %arg7[%c0_21, %c0_22, %c0_23] : memref<1x32x1xf32, #tpu.memory_space<vmem>>, vector<1x32x1xf32>
      %45 = vector.shape_cast %44 : vector<1x32x1xf32> to vector<32x1xf32>
      %46 = vector.shape_cast %43 : vector<32x1xf32> to vector<1x32x1xf32>
      tpu.vector_store %arg7[%c0_21, %c0_22, %c0_23], %46 {strides = array<i32>} : memref<1x32x1xf32, #tpu.memory_space<vmem>>, vector<1x32x1xf32>,
      %c0_24 = arith.constant 0 : index
      %c0_25 = arith.constant 0 : index
      %c0_26 = arith.constant 0 : index
      %47 = vector.load %arg8[%c0_24, %c0_25, %c0_26] : memref<1x32x1xf32, #tpu.memory_space<vmem>>, vector<1x32x1xf32>
      %48 = vector.shape_cast %47 : vector<1x32x1xf32> to vector<32x1xf32>
      %49 = arith.mulf %38, %38 : vector<32x128xf32>
      %cst_27 = arith.constant dense<0.000000e+00> : vector<32xf32>
      %50 = vector.multi_reduction <add>, %49, %cst_27 [1] : vector<32x128xf32> to vector<32xf32>
      %51 = vector.shape_cast %50 : vector<32xf32> to vector<32x1xf32>
      %52 = arith.addf %48, %51 : vector<32x1xf32>
      %c0_28 = arith.constant 0 : index
      %c0_29 = arith.constant 0 : index
      %c0_30 = arith.constant 0 : index
      %53 = vector.load %arg8[%c0_28, %c0_29, %c0_30] : memref<1x32x1xf32, #tpu.memory_space<vmem>>, vector<1x32x1xf32>
      %54 = vector.shape_cast %53 : vector<1x32x1xf32> to vector<32x1xf32>
      %55 = vector.shape_cast %52 : vector<32x1xf32> to vector<1x32x1xf32>
      tpu.vector_store %arg8[%c0_28, %c0_29, %c0_30], %55 {strides = array<i32>} : memref<1x32x1xf32, #tpu.memory_space<vmem>>, vector<1x32x1xf32>,
    } else {
    }
    return
  }
  func.func @transform_0(%arg0: i32, %arg1: i32) -> (i32, i32) {
    %c0_i32 = arith.constant 0 : i32
    %c0_i32_0 = arith.constant 0 : i32
    %c0_i32_1 = arith.constant 0 : i32
    return %c0_i32, %c0_i32_0 : i32, i32
  }
  func.func @transform_1(%arg0: i32, %arg1: i32) -> (i32, i32) {
    %c1_i32 = arith.constant 1 : i32
    %0 = arith.muli %arg0, %c1_i32 : i32
    %1 = arith.addi %0, %arg1 : i32
    %c0_i32 = arith.constant 0 : i32
    %c0_i32_0 = arith.constant 0 : i32
    return %c0_i32, %1 : i32, i32
  }
  func.func @transform_2(%arg0: i32, %arg1: i32) -> (i32, i32) {
    %c0_i32 = arith.constant 0 : i32
    %c0_i32_0 = arith.constant 0 : i32
    %c0_i32_1 = arith.constant 0 : i32
    return %c0_i32, %c0_i32_0 : i32, i32
  }
  func.func @transform_3(%arg0: i32, %arg1: i32) -> (i32, i32) {
    %c0_i32 = arith.constant 0 : i32
    %c0_i32_0 = arith.constant 0 : i32
    %c0_i32_1 = arith.constant 0 : i32
    return %c0_i32, %c0_i32_0 : i32, i32
  }
  func.func @transform_4(%arg0: i32, %arg1: i32) -> (i32, i32) {
    %c1_i32 = arith.constant 1 : i32
    %0 = arith.muli %arg0, %c1_i32 : i32
    %1 = arith.addi %0, %arg1 : i32
    %c0_i32 = arith.constant 0 : i32
    %c0_i32_0 = arith.constant 0 : i32
    return %c0_i32, %1 : i32, i32
  }
  func.func @transform_5(%arg0: i32, %arg1: i32) -> (i32, i32, i32) {
    %c0_i32 = arith.constant 0 : i32
    %c0_i32_0 = arith.constant 0 : i32
    %c0_i32_1 = arith.constant 0 : i32
    return %arg0, %c0_i32, %c0_i32_0 : i32, i32, i32
  }
  func.func @transform_6(%arg0: i32, %arg1: i32) -> (i32, i32, i32) {
    %c0_i32 = arith.constant 0 : i32
    %c0_i32_0 = arith.constant 0 : i32
    %c0_i32_1 = arith.constant 0 : i32
    return %arg0, %c0_i32, %c0_i32_0 : i32, i32, i32
  }
}

module attributes {stable_mosaic.version = 11 : i64} {
  func.func @_conv_bias_kernel(%arg0: i32, %arg1: memref<16x512xbf16, #tpu.memory_space<vmem>>, %arg2: memref<512x128xbf16, #tpu.memory_space<vmem>>, %arg3: memref<512x1xf32, #tpu.memory_space<vmem>>, %arg4: memref<512x1xf32, #tpu.memory_space<vmem>>, %arg5: memref<16x1xf32, #tpu.memory_space<vmem>>, %arg6: memref<16x128xf32, #tpu.memory_space<vmem>>) attributes {dimension_semantics = [#tpu.dimension_semantics<parallel>], iteration_bounds = array<i64: 1>, scalar_prefetch = 0 : i64, scratch_operands = 0 : i64, tpu.core_type = #tpu.core_type<tc>, window_params = [{pipeline_mode = #tpu.pipeline_mode<synchronous>, transform_indices = @transform_0, window_bounds = array<i64: 16, 512>}, {transform_indices = @transform_1, window_bounds = array<i64: 512, 128>}, {pipeline_mode = #tpu.pipeline_mode<synchronous>, transform_indices = @transform_2, window_bounds = array<i64: 512, 1>}, {pipeline_mode = #tpu.pipeline_mode<synchronous>, transform_indices = @transform_3, window_bounds = array<i64: 512, 1>}, {pipeline_mode = #tpu.pipeline_mode<synchronous>, transform_indices = @transform_4, window_bounds = array<i64: 16, 1>}, {transform_indices = @transform_5, window_bounds = array<i64: 16, 128>}]} {
    %c0 = arith.constant 0 : index
    %c0_0 = arith.constant 0 : index
    %0 = vector.load %arg2[%c0, %c0_0] : memref<512x128xbf16, #tpu.memory_space<vmem>>, vector<512x128xbf16>
    %1 = arith.extf %0 : vector<512x128xbf16> to vector<512x128xf32>
    %c0_1 = arith.constant 0 : index
    %c0_2 = arith.constant 0 : index
    %2 = vector.load %arg3[%c0_1, %c0_2] : memref<512x1xf32, #tpu.memory_space<vmem>>, vector<512x1xf32>
    %3 = vector.broadcast %2 : vector<512x1xf32> to vector<512x128xf32>
    %4 = arith.mulf %1, %3 : vector<512x128xf32>
    %c0_3 = arith.constant 0 : index
    %c0_4 = arith.constant 0 : index
    %5 = vector.load %arg4[%c0_3, %c0_4] : memref<512x1xf32, #tpu.memory_space<vmem>>, vector<512x1xf32>
    %6 = vector.broadcast %5 : vector<512x1xf32> to vector<512x128xf32>
    %7 = arith.addf %4, %6 : vector<512x128xf32>
    %cst = arith.constant 0.000000e+00 : f32
    %8 = vector.broadcast %cst : f32 to vector<512x128xf32>
    %9 = arith.cmpf ogt, %7, %8 : vector<512x128xf32>
    %cst_5 = arith.constant 2.000000e-01 : f32
    %10 = vector.broadcast %cst_5 : f32 to vector<512x128xf32>
    %11 = arith.mulf %10, %7 : vector<512x128xf32>
    %12 = arith.select %9, %7, %11 : vector<512x128xi1>, vector<512x128xf32>
    %c0_6 = arith.constant 0 : index
    %c0_7 = arith.constant 0 : index
    %13 = vector.load %arg1[%c0_6, %c0_7] : memref<16x512xbf16, #tpu.memory_space<vmem>>, vector<16x512xbf16>
    %14 = arith.truncf %12 : vector<512x128xf32> to vector<512x128xbf16>
    %cst_8 = arith.constant dense<0.000000e+00> : vector<16x128xf32>
    %15 = tpu.matmul %13, %14, %cst_8 {dimension_numbers = #tpu.dot_dimension_numbers<[1], [0], [0], [1], [0, 0, 1, 1], [], []>} : vector<16x512xbf16>, vector<512x128xbf16>, vector<16x128xf32> -> vector<16x128xf32>
    %c0_9 = arith.constant 0 : index
    %c0_10 = arith.constant 0 : index
    %16 = vector.load %arg5[%c0_9, %c0_10] : memref<16x1xf32, #tpu.memory_space<vmem>>, vector<16x1xf32>
    %17 = vector.broadcast %16 : vector<16x1xf32> to vector<16x128xf32>
    %18 = arith.addf %15, %17 : vector<16x128xf32>
    %c0_11 = arith.constant 0 : index
    %c0_12 = arith.constant 0 : index
    %19 = vector.load %arg6[%c0_11, %c0_12] : memref<16x128xf32, #tpu.memory_space<vmem>>, vector<16x128xf32>
    tpu.vector_store %arg6[%c0_11, %c0_12], %18 {strides = array<i32>} : memref<16x128xf32, #tpu.memory_space<vmem>>, vector<16x128xf32>,
    return
  }
  func.func @transform_0(%arg0: i32) -> (i32, i32) {
    %c0_i32 = arith.constant 0 : i32
    %c0_i32_0 = arith.constant 0 : i32
    %c0_i32_1 = arith.constant 0 : i32
    return %c0_i32, %c0_i32_0 : i32, i32
  }
  func.func @transform_1(%arg0: i32) -> (i32, i32) {
    %c0_i32 = arith.constant 0 : i32
    %c0_i32_0 = arith.constant 0 : i32
    return %c0_i32, %arg0 : i32, i32
  }
  func.func @transform_2(%arg0: i32) -> (i32, i32) {
    %c0_i32 = arith.constant 0 : i32
    %c0_i32_0 = arith.constant 0 : i32
    %c0_i32_1 = arith.constant 0 : i32
    return %c0_i32, %c0_i32_0 : i32, i32
  }
  func.func @transform_3(%arg0: i32) -> (i32, i32) {
    %c0_i32 = arith.constant 0 : i32
    %c0_i32_0 = arith.constant 0 : i32
    %c0_i32_1 = arith.constant 0 : i32
    return %c0_i32, %c0_i32_0 : i32, i32
  }
  func.func @transform_4(%arg0: i32) -> (i32, i32) {
    %c0_i32 = arith.constant 0 : i32
    %c0_i32_0 = arith.constant 0 : i32
    %c0_i32_1 = arith.constant 0 : i32
    return %c0_i32, %c0_i32_0 : i32, i32
  }
  func.func @transform_5(%arg0: i32) -> (i32, i32) {
    %c0_i32 = arith.constant 0 : i32
    %c0_i32_0 = arith.constant 0 : i32
    return %c0_i32, %arg0 : i32, i32
  }
}

</mosaic_0001>

<bundles_post_ra>
// kernel: tile.28
= control target key start
LH: loop header
LB: loop body
LE: loop exit
PB: predicated region body
PF: predicated region fallthrough
CT: control target
= control target key end

     0   :  { %s28_s0 = inlined_call_operand.vmem [shape: f32[16], index: 0, kind: input, shape index: {}]   ;;  %s29_s1 = inlined_call_operand.vmem [shape: f32[16,16], index: 1, kind: output, shape index: {}]  }
   0x1   :  { %v4_v0 = vld [vmem:[%s28_s0] ss:$0 sm:$0xff] }
   0x2   :  { %5 = vst [vmem:[%s29_s1] sm:$0xff] %v4_v0  ;;  %8 = vst [vmem:[%s29_s1 + $0x8] sm:$0xff] %v4_v0 }

// kernel: discriminator_forward.3
= control target key start
LH: loop header
LB: loop body
LE: loop exit
PB: predicated region body
PF: predicated region fallthrough
CT: control target
= control target key end

     0   :  { %v304_v0 = vmov 0.0   ;;  %vm305_vm0 = vmmov 0   ;;  %v306_v3 = vmov 0   ;;  %vm87_vm1 = vcmask 130048   ;;  %s400_s1 = inlined_call_operand.vmem [shape: bf16[16,384], index: 1, kind: input, shape index: {}]   ;;  %s401_s0 = inlined_call_operand.vmem [shape: bf16[16,16], index: 0, kind: input, shape index: {}]   ;;  %s402_s3 = inlined_call_operand.vmem [shape: f32[1,16,1], index: 3, kind: output, shape index: {1}]   ;;  %s403_s2 = inlined_call_operand.vmem [shape: bf16[16,384], index: 2, kind: output, shape index: {0}]   ;;  %s404_s4 = inlined_call_operand.vmem [shape: f32[1,16,1], index: 4, kind: output, shape index: {2}]  }
   0x1   :  { %290 = vmatprep.subr.bf16.mxu1 %v304_v0  ;;  %v299_v1 = vld [vmem:[%s400_s1 + $0x4] ss:$12 sps:$4 sm:$0xff]   ;;  %292 = vmatprep.mubr.msk.bf16.mxu1 %vm305_vm0, %v304_v0  ;;  %v301_v2 = vld [vmem:[%s400_s1 + $0x8] ss:$12 sps:$4 sm:$0xff]   ;;  %v302_v4 = vld [vmem:[%s400_s1] ss:$12 sps:$4 sm:$0xff]  }
   0x2   :  { %123 = vmatprep.mubr.bf16.mxu0 %v306_v3  ;;  %105 = vmatprep.subr.bf16.mxu0 %v299_v1  ;;  %v303_v5 = vld [vmem:[%s401_s0] sm:$0xff]   ;;  %vm55_vm2 = vcmask 7168  }
   0x3   :  { %291 = vmatpush3.bf16.msra.mxu1 %v301_v2  ;;  %106 = vmatpush1.bf16.msra.mxu0 %v302_v4  ;;  %56 = vst.msk [vmem:[%s402_s3] sm:$0xff] %vm55_vm2, %v304_v0  ;;  %57 = vst.msk [vmem:[%s402_s3 + $0x8] sm:$0xff] %vm55_vm2, %v304_v0 }
   0x4   :  { %58 = vst.msk [vmem:[%s404_s4] sm:$0xff] %vm55_vm2, %v304_v0  ;;  %59 = vst.msk [vmem:[%s404_s4 + $0x8] sm:$0xff] %vm55_vm2, %v304_v0 }
   0x6   :  { %293 = vmatmul.mubr.msk.bf16.vlgmr.msra.gmra.mxu1 %vm87_vm1, %v303_v5  ;;  %278 = vmatmul.mubr.msk.bf16.vlgmr.msra.gmra.mxu0 %vm87_vm1, %v303_v5 }
   0xa   :  { %v199_v32 = vld [vmem:[%s402_s3] sm:$0xff]  ;;  %v200_v37 = vld [vmem:[%s402_s3 + $0x8] sm:$0xff] }
   0xb   :  { %v214_v34 = vld [vmem:[%s404_s4] sm:$0xff]  ;;  %v215_v40 = vld [vmem:[%s404_s4 + $0x8] sm:$0xff] }
  0xc6   :  { %v168_v6 = vpop.f32.mrf.mxu1  ;;  %v125_v8 = vpop.f32.mrf.mxu0 }
  0xc7   :  { %v285_v7 = vpack.c.bf16 %v168_v6, %v168_v6  ;;  %v218_v11 = vmul.f32 %v168_v6, %v168_v6  ;;  %v216_v12 = vmul.f32 %v125_v8, %v125_v8 }
  0xc8   :  { %v294_v9 = vpop.f32.mrf.mxu1  ;;  %v127_v10 = vpop.f32.mrf.mxu0 }
  0xc9   :  { %196 = vst [vmem:[%s403_s2 + $0x8] sm:$0xf] %v285_v7  ;;  %v284_v13 = vpack.c.bf16 %v127_v10, %v125_v8  ;;  %v217_v14 = vmul.f32 %v127_v10, %v127_v10  ;;  %v201_v16 = vadd.f32 %v127_v10, %v125_v8 }
  0xca   :  { %v171_v15 = vpop.f32.mrf.mxu1  ;;  %v129_v18 = vpop.f32.mrf.mxu0 }
  0xcb   :  { %v287_v17 = vpack.c.bf16 %v171_v15, %v171_v15  ;;  %195 = vst [vmem:[%s403_s2] sm:$0xff] %v284_v13  ;;  %v202_v20 = vadd.f32 %v201_v16, %v168_v6  ;;  %v222_v21 = vadd.f32 %v217_v14, %v216_v12  ;;  %v219_v22 = vmul.f32 %v129_v18, %v129_v18 }
  0xcc   :  { %v295_v19 = vpop.f32.mrf.mxu1  ;;  %v131_v23 = vpop.f32.mrf.mxu0  ;;  %v221_v29 = vmul.f32 %v171_v15, %v171_v15 }
  0xcd   :  { %198 = vst [vmem:[%s403_s2 + $0x14] sm:$0xf] %v287_v17  ;;  %v286_v24 = vpack.c.bf16 %v131_v23, %v129_v18  ;;  %v205_v25 = vadd.f32 %v131_v23, %v129_v18  ;;  %v220_v26 = vmul.f32 %v131_v23, %v131_v23  ;;  %203 = vadd.xlane.f32.xlu0 %v202_v20 }
  0xce   :  { %v223_v27 = vadd.f32 %v222_v21, %v218_v11 }
  0xcf   :  { %197 = vst [vmem:[%s403_s2 + $0xc] sm:$0xff] %v286_v24  ;;  %v206_v28 = vadd.f32 %v205_v25, %v171_v15  ;;  %v226_v30 = vadd.f32 %v220_v26, %v219_v22 }
  0xd0   :  { %224 = vadd.xlane.f32.xlu1 %v223_v27 }
  0xd1   :  { %207 = vadd.xlane.f32.xlu0 %v206_v28  ;;  %v227_v31 = vadd.f32 %v226_v30, %v221_v29 }
  0xd4   :  { %228 = vadd.xlane.f32.xlu1 %v227_v31 }
 0x156   :  { %v204_v33 = vpop.xlane.xlu0 %203 }
 0x157   :  { %v209_v35 = vadd.f32 %v204_v33, %v199_v32 }
 0x159   :  { %v225_v36 = vpop.xlane.xlu1 %224  ;;  %212 = vst.msk [vmem:[%s402_s3] sm:$0xff] %vm55_vm2, %v209_v35 }
 0x15a   :  { %v230_v38 = vadd.f32 %v225_v36, %v214_v34  ;;  %v208_v39 = vpop.xlane.xlu0 %207 }
 0x15b   :  { %v210_v41 = vadd.f32 %v208_v39, %v200_v37 }
 0x15c   :  { %232 = vst.msk [vmem:[%s404_s4] sm:$0xff] %vm55_vm2, %v230_v38 }
 0x15d   :  { %v229_v42 = vpop.xlane.xlu1 %228  ;;  %213 = vst.msk [vmem:[%s402_s3 + $0x8] sm:$0xff] %vm55_vm2, %v210_v41 }
 0x15e   :  { %v231_v43 = vadd.f32 %v229_v42, %v215_v40 }
 0x160   :  { %233 = vst.msk [vmem:[%s404_s4 + $0x8] sm:$0xff] %vm55_vm2, %v231_v43 }

// kernel: tile.38
= control target key start
LH: loop header
LB: loop body
LE: loop exit
PB: predicated region body
PF: predicated region fallthrough
CT: control target
= control target key end

     0   :  { %s28_s0 = inlined_call_operand.vmem [shape: f32[32], index: 0, kind: input, shape index: {}]   ;;  %s29_s1 = inlined_call_operand.vmem [shape: f32[16,32], index: 1, kind: output, shape index: {}]  }
   0x1   :  { %v4_v0 = vld [vmem:[%s28_s0] ss:$0 sm:$0xff] }
   0x2   :  { %5 = vst [vmem:[%s29_s1] sm:$0xff] %v4_v0  ;;  %8 = vst [vmem:[%s29_s1 + $0x8] sm:$0xff] %v4_v0 }

// kernel: discriminator_forward.4
= control target key start
LH: loop header
LB: loop body
LE: loop exit
PB: predicated region body
PF: predicated region fallthrough
CT: control target
= control target key end

     0   :  { %v1081_v0 = vmov 0   ;;  %s1468_s2 = inlined_call_operand.vmem [shape: f32[256,1], index: 2, kind: input, shape index: {}]   ;;  %s1469_s3 = inlined_call_operand.vmem [shape: f32[256,1], index: 3, kind: input, shape index: {}]   ;;  %s1470_s1 = inlined_call_operand.vmem [shape: bf16[256,128], index: 1, kind: input, shape index: {}]   ;;  %s1471_s0 = inlined_call_operand.vmem [shape: bf16[32,256], index: 0, kind: input, shape index: {}]   ;;  %s1472_s5 = inlined_call_operand.vmem [shape: f32[1,32,1], index: 5, kind: output, shape index: {1}]   ;;  %s1473_s4 = inlined_call_operand.vmem [shape: bf16[32,128], index: 4, kind: output, shape index: {0}]   ;;  %s1474_s6 = inlined_call_operand.vmem [shape: f32[1,32,1], index: 6, kind: output, shape index: {2}]  }
   0x1   :  { %1074 = vset.pattern.permute.xlu1 %v1081_v0  ;;  %1073 = vset.pattern.permute.xlu0 %v1081_v0  ;;  %v156_v1 = vld [vmem:[%s1468_s2 + $0xf0] sm:$0xff]  ;;  %v157_v3 = vld [vmem:[%s1468_s2 + $0xf8] sm:$0xff]  ;;  %v154_v9 = vld [vmem:[%s1468_s2 + $0xe0] sm:$0xff] }
   0x2   :  { %v140_v2 = vld [vmem:[%s1468_s2 + $0x70] sm:$0xff]  ;;  %310 = vperm.xlu0 %1073, %v156_v1   ;;  %v141_v4 = vld [vmem:[%s1468_s2 + $0x78] sm:$0xff]  ;;  %v155_v10 = vld [vmem:[%s1468_s2 + $0xe8] sm:$0xff] }
   0x3   :  { %230 = vperm.xlu1 %1074, %v140_v2   ;;  %v380_v5 = vld [vmem:[%s1469_s3 + $0xf0] sm:$0xff]  ;;  %v381_v6 = vld [vmem:[%s1469_s3 + $0xf8] sm:$0xff]  ;;  %v139_v11 = vld [vmem:[%s1468_s2 + $0x68] sm:$0xff] }
   0x4   :  { %v364_v7 = vld [vmem:[%s1469_s3 + $0x70] sm:$0xff]  ;;  %v365_v8 = vld [vmem:[%s1469_s3 + $0x78] sm:$0xff]  ;;  %v138_v12 = vld [vmem:[%s1468_s2 + $0x60] sm:$0xff] }
   0x5   :  { %v379_v13 = vld [vmem:[%s1469_s3 + $0xe8] sm:$0xff]  ;;  %v378_v14 = vld [vmem:[%s1469_s3 + $0xe0] sm:$0xff]  ;;  %v153_v17 = vld [vmem:[%s1468_s2 + $0xd8] sm:$0xff] }
   0x6   :  { %315 = vperm.xlu0 %1073, %v157_v3   ;;  %v363_v15 = vld [vmem:[%s1469_s3 + $0x68] sm:$0xff]  ;;  %v362_v16 = vld [vmem:[%s1469_s3 + $0x60] sm:$0xff]  ;;  %v152_v18 = vld [vmem:[%s1468_s2 + $0xd0] sm:$0xff] }
   0x7   :  { %235 = vperm.xlu1 %1074, %v141_v4   ;;  %v137_v19 = vld [vmem:[%s1468_s2 + $0x58] sm:$0xff]  ;;  %v136_v20 = vld [vmem:[%s1468_s2 + $0x50] sm:$0xff]  ;;  %v151_v25 = vld [vmem:[%s1468_s2 + $0xc8] sm:$0xff] }
   0x8   :  { %v377_v21 = vld [vmem:[%s1469_s3 + $0xd8] sm:$0xff]  ;;  %v376_v22 = vld [vmem:[%s1469_s3 + $0xd0] sm:$0xff]  ;;  %v150_v26 = vld [vmem:[%s1468_s2 + $0xc0] sm:$0xff] }
   0x9   :  { %v361_v23 = vld [vmem:[%s1469_s3 + $0x58] sm:$0xff]  ;;  %v360_v24 = vld [vmem:[%s1469_s3 + $0x50] sm:$0xff]  ;;  %v135_v27 = vld [vmem:[%s1468_s2 + $0x48] sm:$0xff] }
   0xa   :  { %534 = vperm.xlu0 %1073, %v380_v5   ;;  %v134_v28 = vld [vmem:[%s1468_s2 + $0x40] sm:$0xff]  ;;  %v375_v29 = vld [vmem:[%s1469_s3 + $0xc8] sm:$0xff]  ;;  %v149_v33 = vld [vmem:[%s1468_s2 + $0xb8] sm:$0xff] }
   0xb   :  { %539 = vperm.xlu1 %1074, %v381_v6   ;;  %v374_v30 = vld [vmem:[%s1469_s3 + $0xc0] sm:$0xff]  ;;  %v359_v31 = vld [vmem:[%s1469_s3 + $0x48] sm:$0xff]  ;;  %v148_v34 = vld [vmem:[%s1468_s2 + $0xb0] sm:$0xff] }
   0xc   :  { %v358_v32 = vld [vmem:[%s1469_s3 + $0x40] sm:$0xff]  ;;  %v133_v35 = vld [vmem:[%s1468_s2 + $0x38] sm:$0xff]  ;;  %v132_v36 = vld [vmem:[%s1468_s2 + $0x30] sm:$0xff] }
   0xd   :  { %v373_v37 = vld [vmem:[%s1469_s3 + $0xb8] sm:$0xff]  ;;  %v372_v38 = vld [vmem:[%s1469_s3 + $0xb0] sm:$0xff]  ;;  %v147_v41 = vld [vmem:[%s1468_s2 + $0xa8] sm:$0xff] }
   0xe   :  { %454 = vperm.xlu0 %1073, %v364_v7   ;;  %v357_v39 = vld [vmem:[%s1469_s3 + $0x38] sm:$0xff]  ;;  %v356_v40 = vld [vmem:[%s1469_s3 + $0x30] sm:$0xff]  ;;  %v146_v42 = vld [vmem:[%s1468_s2 + $0xa0] sm:$0xff] }
   0xf   :  { %459 = vperm.xlu1 %1074, %v365_v8   ;;  %v131_v43 = vld [vmem:[%s1468_s2 + $0x28] sm:$0xff]  ;;  %v130_v44 = vld [vmem:[%s1468_s2 + $0x20] sm:$0xff]  ;;  %v145_v49 = vld [vmem:[%s1468_s2 + $0x98] sm:$0xff] }
  0x10   :  { %v371_v45 = vld [vmem:[%s1469_s3 + $0xa8] sm:$0xff]  ;;  %v370_v46 = vld [vmem:[%s1469_s3 + $0xa0] sm:$0xff]  ;;  %v144_v50 = vld [vmem:[%s1468_s2 + $0x90] sm:$0xff] }
  0x11   :  { %v355_v47 = vld [vmem:[%s1469_s3 + $0x28] sm:$0xff]  ;;  %v354_v48 = vld [vmem:[%s1469_s3 + $0x20] sm:$0xff]  ;;  %v129_v51 = vld [vmem:[%s1468_s2 + $0x18] sm:$0xff] }
  0x12   :  { %300 = vperm.xlu0 %1073, %v154_v9   ;;  %v128_v52 = vld [vmem:[%s1468_s2 + $0x10] sm:$0xff]  ;;  %v369_v53 = vld [vmem:[%s1469_s3 + $0x98] sm:$0xff]  ;;  %v143_v57 = vld [vmem:[%s1468_s2 + $0x88] sm:$0xff] }
  0x13   :  { %305 = vperm.xlu1 %1074, %v155_v10   ;;  %v368_v54 = vld [vmem:[%s1469_s3 + $0x90] sm:$0xff]  ;;  %v353_v55 = vld [vmem:[%s1469_s3 + $0x18] sm:$0xff]  ;;  %v142_v58 = vld [vmem:[%s1468_s2 + $0x80] sm:$0xff] }
  0x14   :  { %v352_v56 = vld [vmem:[%s1469_s3 + $0x10] sm:$0xff]  ;;  %v127_v59 = vld [vmem:[%s1468_s2 + $0x8] sm:$0xff]  ;;  %v126_v60 = vld [vmem:[%s1468_s2] sm:$0xff] }
  0x15   :  { %v367_v61 = vld [vmem:[%s1469_s3 + $0x88] sm:$0xff]  ;;  %v366_v62 = vld [vmem:[%s1469_s3 + $0x80] sm:$0xff]  ;;  %v1025_v2 = vld [vmem:[%s1470_s1 + $0x78] sm:$0xff]  }
  0x16   :  { %220 = vperm.xlu0 %1073, %v138_v12   ;;  %v351_v63 = vld [vmem:[%s1469_s3 + $0x8] sm:$0xff]  ;;  %v350_v0 = vld [vmem:[%s1469_s3] sm:$0xff]  ;;  %v999_v4 = vunpack.c.l.bf16 %v1025_v2  ;;  %v1017_v5 = vld [vmem:[%s1470_s1 + $0x38] sm:$0xff]   ;;  %v1000_v6 = vunpack.c.h.bf16 %v1025_v2 }
  0x17   :  { %225 = vperm.xlu1 %1074, %v139_v11   ;;  %v1077_v9 = vld [vmem:[%s1471_s0 + $0x4] ss:$8 sps:$4 sm:$0xff]   ;;  %v967_v10 = vunpack.c.l.bf16 %v1017_v5  ;;  %v968_v11 = vunpack.c.h.bf16 %v1017_v5  ;;  %v1080_v12 = vld [vmem:[%s1471_s0 + $0x14] ss:$8 sps:$4 sm:$0xff]  }
  0x18   :  { %742 = vmatprep.mubr.bf16.mxu0 %v1077_v9  ;;  %750 = vmatprep.mubr.bf16.mxu1 %v1080_v12 }
  0x1a   :  { %524 = vperm.xlu0 %1073, %v378_v14  }
  0x1b   :  { %529 = vperm.xlu1 %1074, %v379_v13  }
  0x1e   :  { %444 = vperm.xlu0 %1073, %v362_v16  }
  0x1f   :  { %449 = vperm.xlu1 %1074, %v363_v15  }
  0x22   :  { %290 = vperm.xlu0 %1073, %v152_v18  }
  0x23   :  { %295 = vperm.xlu1 %1074, %v153_v17  }
  0x26   :  { %210 = vperm.xlu0 %1073, %v136_v20  }
  0x27   :  { %215 = vperm.xlu1 %1074, %v137_v19  }
  0x2a   :  { %514 = vperm.xlu0 %1073, %v376_v22  }
  0x2b   :  { %519 = vperm.xlu1 %1074, %v377_v21  }
  0x2e   :  { %434 = vperm.xlu0 %1073, %v360_v24  }
  0x2f   :  { %439 = vperm.xlu1 %1074, %v361_v23  }
  0x32   :  { %280 = vperm.xlu0 %1073, %v150_v26  }
  0x33   :  { %285 = vperm.xlu1 %1074, %v151_v25  }
  0x36   :  { %200 = vperm.xlu0 %1073, %v134_v28  }
  0x37   :  { %205 = vperm.xlu1 %1074, %v135_v27  }
  0x3a   :  { %504 = vperm.xlu0 %1073, %v374_v30  }
  0x3b   :  { %509 = vperm.xlu1 %1074, %v375_v29  }
  0x3e   :  { %424 = vperm.xlu0 %1073, %v358_v32  }
  0x3f   :  { %429 = vperm.xlu1 %1074, %v359_v31  }
  0x42   :  { %270 = vperm.xlu0 %1073, %v148_v34  }
  0x43   :  { %275 = vperm.xlu1 %1074, %v149_v33   ;;  %v1024_v33 = vld [vmem:[%s1470_s1 + $0x70] sm:$0xff]  }
  0x46   :  { %190 = vperm.xlu0 %1073, %v132_v36  }
  0x47   :  { %195 = vperm.xlu1 %1074, %v133_v35  }
  0x4a   :  { %494 = vperm.xlu0 %1073, %v372_v38   ;;  %v995_v38 = vunpack.c.l.bf16 %v1024_v33 }
  0x4b   :  { %499 = vperm.xlu1 %1074, %v373_v37  }
  0x4e   :  { %414 = vperm.xlu0 %1073, %v356_v40   ;;  %v1016_v40 = vld [vmem:[%s1470_s1 + $0x30] sm:$0xff]  }
  0x4f   :  { %419 = vperm.xlu1 %1074, %v357_v39   ;;  %v996_v39 = vunpack.c.h.bf16 %v1024_v33  ;;  %v1022_v33 = vld [vmem:[%s1470_s1 + $0x60] sm:$0xff]  }
  0x52   :  { %260 = vperm.xlu0 %1073, %v146_v42  }
  0x53   :  { %265 = vperm.xlu1 %1074, %v147_v41  }
  0x56   :  { %180 = vperm.xlu0 %1073, %v130_v44   ;;  %v963_v44 = vunpack.c.l.bf16 %v1016_v40 }
  0x57   :  { %185 = vperm.xlu1 %1074, %v131_v43   ;;  %v964_v43 = vunpack.c.h.bf16 %v1016_v40  ;;  %v1014_v40 = vld [vmem:[%s1470_s1 + $0x20] sm:$0xff]  }
  0x5a   :  { %484 = vperm.xlu0 %1073, %v370_v46  }
  0x5b   :  { %489 = vperm.xlu1 %1074, %v371_v45  }
  0x5e   :  { %404 = vperm.xlu0 %1073, %v354_v48  }
  0x5f   :  { %409 = vperm.xlu1 %1074, %v355_v47  }
  0x62   :  { %250 = vperm.xlu0 %1073, %v144_v50  }
  0x63   :  { %255 = vperm.xlu1 %1074, %v145_v49  }
  0x66   :  { %170 = vperm.xlu0 %1073, %v128_v52  }
  0x67   :  { %175 = vperm.xlu1 %1074, %v129_v51  }
  0x6a   :  { %474 = vperm.xlu0 %1073, %v368_v54  }
  0x6b   :  { %479 = vperm.xlu1 %1074, %v369_v53  }
  0x6e   :  { %394 = vperm.xlu0 %1073, %v352_v56  }
  0x6f   :  { %399 = vperm.xlu1 %1074, %v353_v55  }
  0x72   :  { %240 = vperm.xlu0 %1073, %v142_v58  }
  0x73   :  { %245 = vperm.xlu1 %1074, %v143_v57  }
  0x76   :  { %160 = vperm.xlu0 %1073, %v126_v60  }
  0x77   :  { %165 = vperm.xlu1 %1074, %v127_v59  }
  0x7a   :  { %464 = vperm.xlu0 %1073, %v366_v62  }
  0x7b   :  { %469 = vperm.xlu1 %1074, %v367_v61  }
  0x7d   :  { %v311_v1 = vpop.permute.xlu0 %310 }
  0x7e   :  { %v231_v3 = vpop.permute.xlu1 %230  ;;  %384 = vperm.xlu0 %1073, %v350_v0   ;;  %v348_v13 = vmul.f32 %v999_v4, %v311_v1  ;;  %v1023_v1 = vld [vmem:[%s1470_s1 + $0x68] sm:$0xff]  }
  0x7f   :  { %389 = vperm.xlu1 %1074, %v351_v63   ;;  %v332_v19 = vmul.f32 %v967_v10, %v231_v3 }
  0x81   :  { %v316_v7 = vpop.permute.xlu0 %315 }
  0x82   :  { %v236_v8 = vpop.permute.xlu1 %235  ;;  %v349_v14 = vmul.f32 %v1000_v6, %v316_v7  ;;  %v992_v6 = vunpack.c.h.bf16 %v1023_v1  ;;  %v991_v7 = vunpack.c.l.bf16 %v1023_v1  ;;  %v1021_v1 = vld [vmem:[%s1470_s1 + $0x58] sm:$0xff]  }
  0x83   :  { %v333_v20 = vmul.f32 %v968_v11, %v236_v8  ;;  %v1015_v8 = vld [vmem:[%s1470_s1 + $0x28] sm:$0xff]  }
  0x84   :  { %v960_v11 = vunpack.c.h.bf16 %v1015_v8  ;;  %v959_v12 = vunpack.c.l.bf16 %v1015_v8  ;;  %v1013_v8 = vld [vmem:[%s1470_s1 + $0x18] sm:$0xff]  }
  0x85   :  { %v535_v15 = vpop.permute.xlu0 %534 }
  0x86   :  { %v540_v16 = vpop.permute.xlu1 %539  ;;  %v572_v17 = vadd.f32 %v535_v15, %v348_v13 }
  0x87   :  { %v573_v18 = vadd.f32 %v540_v16, %v349_v14 }
  0x88   :  { %v636_v21 = vmul.f32 0.2, %v572_v17  ;;  %vm604_vm0 = vcmp.gt.f32.partialorder %v572_v17, 0.0 }
  0x89   :  { %v637_v22 = vmul.f32 0.2, %v573_v18  ;;  %vm605_vm1 = vcmp.gt.f32.partialorder %v573_v18, 0.0  ;;  %v455_v23 = vpop.permute.xlu0 %454 }
  0x8a   :  { %v460_v24 = vpop.permute.xlu1 %459  ;;  %v556_v25 = vadd.f32 %v455_v23, %v332_v19  ;;  %v668_v27 = vsel %vm604_vm0, %v572_v17, %v636_v21 }
  0x8b   :  { %v557_v26 = vadd.f32 %v460_v24, %v333_v20  ;;  %v669_v28 = vsel %vm605_vm1, %v573_v18, %v637_v22 }
  0x8c   :  { %v685_v29 = vpack.c.bf16 %v669_v28, %v668_v27  ;;  %v620_v30 = vmul.f32 0.2, %v556_v25  ;;  %vm588_vm2 = vcmp.gt.f32.partialorder %v556_v25, 0.0 }
  0x8d   :  { %v621_v31 = vmul.f32 0.2, %v557_v26  ;;  %vm589_vm3 = vcmp.gt.f32.partialorder %v557_v26, 0.0  ;;  %v301_v32 = vpop.permute.xlu0 %300 }
  0x8e   :  { %v306_v34 = vpop.permute.xlu1 %305  ;;  %1027 = vmatprep.subr.bf16.mxu0 %v685_v29  ;;  %1055 = vmatprep.subr.bf16.mxu1 %v685_v29  ;;  %v652_v35 = vsel %vm588_vm2, %v556_v25, %v620_v30  ;;  %v346_v45 = vmul.f32 %v995_v38, %v301_v32  ;;  %v988_v38 = vunpack.c.h.bf16 %v1022_v33 }
  0x8f   :  { %v653_v36 = vsel %vm589_vm3, %v557_v26, %v621_v31  ;;  %v347_v46 = vmul.f32 %v996_v39, %v306_v34  ;;  %v987_v39 = vunpack.c.l.bf16 %v1022_v33  ;;  %v1020_v33 = vld [vmem:[%s1470_s1 + $0x50] sm:$0xff]  }
  0x90   :  { %v677_v37 = vpack.c.bf16 %v653_v36, %v652_v35 }
  0x91   :  { %v221_v42 = vpop.permute.xlu0 %220 }
  0x92   :  { %v226_v41 = vpop.permute.xlu1 %225  ;;  %1028 = vmatpush3.bf16.msra.mxu0 %v677_v37  ;;  %1063 = vmatpush3.bf16.msra.mxu1 %v677_v37  ;;  %v330_v52 = vmul.f32 %v963_v44, %v221_v42  ;;  %v955_v44 = vunpack.c.l.bf16 %v1014_v40 }
  0x93   :  { %v331_v51 = vmul.f32 %v964_v43, %v226_v41  ;;  %v956_v43 = vunpack.c.h.bf16 %v1014_v40  ;;  %v1012_v40 = vld [vmem:[%s1470_s1 + $0x10] sm:$0xff]  }
  0x95   :  { %v525_v48 = vpop.permute.xlu0 %524 }
  0x96   :  { %v530_v47 = vpop.permute.xlu1 %529  ;;  %v570_v50 = vadd.f32 %v525_v48, %v346_v45 }
  0x97   :  { %v571_v49 = vadd.f32 %v530_v47, %v347_v46 }
  0x98   :  { %vm602_vm5 = vcmp.gt.f32.partialorder %v570_v50, 0.0  ;;  %v634_v54 = vmul.f32 0.2, %v570_v50 }
  0x99   :  { %vm603_vm4 = vcmp.gt.f32.partialorder %v571_v49, 0.0  ;;  %v635_v53 = vmul.f32 0.2, %v571_v49  ;;  %v445_v56 = vpop.permute.xlu0 %444 }
  0x9a   :  { %v450_v55 = vpop.permute.xlu1 %449  ;;  %v554_v58 = vadd.f32 %v445_v56, %v330_v52  ;;  %v666_v59 = vsel %vm602_vm5, %v570_v50, %v634_v54 }
  0x9b   :  { %v555_v57 = vadd.f32 %v450_v55, %v331_v51  ;;  %v667_v60 = vsel %vm603_vm4, %v571_v49, %v635_v53 }
  0x9c   :  { %v684_v61 = vpack.c.bf16 %v667_v60, %v666_v59  ;;  %vm586_vm7 = vcmp.gt.f32.partialorder %v554_v58, 0.0  ;;  %v618_v63 = vmul.f32 0.2, %v554_v58 }
  0x9d   :  { %vm587_vm6 = vcmp.gt.f32.partialorder %v555_v57, 0.0  ;;  %v619_v62 = vmul.f32 0.2, %v555_v57  ;;  %v291_v2 = vpop.permute.xlu0 %290 }
  0x9e   :  { %v296_v0 = vpop.permute.xlu1 %295  ;;  %1029 = vmatprep.subr.bf16.mxu0 %v684_v61  ;;  %1056 = vmatprep.subr.bf16.mxu1 %v684_v61  ;;  %v650_v3 = vsel %vm586_vm7, %v554_v58, %v618_v63  ;;  %v344_v14 = vmul.f32 %v991_v7, %v291_v2  ;;  %v983_v7 = vunpack.c.l.bf16 %v1021_v1 }
  0x9f   :  { %v651_v4 = vsel %vm587_vm6, %v555_v57, %v619_v62  ;;  %v345_v13 = vmul.f32 %v992_v6, %v296_v0  ;;  %v984_v6 = vunpack.c.h.bf16 %v1021_v1  ;;  %v1019_v1 = vld [vmem:[%s1470_s1 + $0x48] sm:$0xff]  }
  0xa0   :  { %v676_v5 = vpack.c.bf16 %v651_v4, %v650_v3 }
  0xa1   :  { %v211_v10 = vpop.permute.xlu0 %210 }
  0xa2   :  { %v216_v9 = vpop.permute.xlu1 %215  ;;  %1030 = vmatpush3.bf16.msra.mxu0 %v676_v5  ;;  %1064 = vmatpush3.bf16.msra.mxu1 %v676_v5  ;;  %v328_v20 = vmul.f32 %v959_v12, %v211_v10  ;;  %v951_v12 = vunpack.c.l.bf16 %v1013_v8 }
  0xa3   :  { %v329_v19 = vmul.f32 %v960_v11, %v216_v9  ;;  %v952_v11 = vunpack.c.h.bf16 %v1013_v8  ;;  %v1011_v8 = vld [vmem:[%s1470_s1 + $0x8] sm:$0xff]  }
  0xa5   :  { %v515_v16 = vpop.permute.xlu0 %514 }
  0xa6   :  { %v520_v15 = vpop.permute.xlu1 %519  ;;  %v568_v18 = vadd.f32 %v515_v16, %v344_v14 }
  0xa7   :  { %v569_v17 = vadd.f32 %v520_v15, %v345_v13 }
  0xa8   :  { %vm600_vm9 = vcmp.gt.f32.partialorder %v568_v18, 0.0  ;;  %v632_v22 = vmul.f32 0.2, %v568_v18 }
  0xa9   :  { %vm601_vm8 = vcmp.gt.f32.partialorder %v569_v17, 0.0  ;;  %v633_v21 = vmul.f32 0.2, %v569_v17  ;;  %v435_v24 = vpop.permute.xlu0 %434 }
  0xaa   :  { %v440_v23 = vpop.permute.xlu1 %439  ;;  %v552_v26 = vadd.f32 %v435_v24, %v328_v20  ;;  %v664_v27 = vsel %vm600_vm9, %v568_v18, %v632_v22 }
  0xab   :  { %v553_v25 = vadd.f32 %v440_v23, %v329_v19  ;;  %v665_v28 = vsel %vm601_vm8, %v569_v17, %v633_v21 }
  0xac   :  { %v683_v29 = vpack.c.bf16 %v665_v28, %v664_v27  ;;  %vm584_vm11 = vcmp.gt.f32.partialorder %v552_v26, 0.0  ;;  %v616_v31 = vmul.f32 0.2, %v552_v26 }
  0xad   :  { %vm585_vm10 = vcmp.gt.f32.partialorder %v553_v25, 0.0  ;;  %v617_v30 = vmul.f32 0.2, %v553_v25  ;;  %v281_v34 = vpop.permute.xlu0 %280 }
  0xae   :  { %v286_v32 = vpop.permute.xlu1 %285  ;;  %1031 = vmatprep.subr.bf16.mxu0 %v683_v29  ;;  %1057 = vmatprep.subr.bf16.mxu1 %v683_v29  ;;  %v648_v35 = vsel %vm584_vm11, %v552_v26, %v616_v31  ;;  %v342_v46 = vmul.f32 %v987_v39, %v281_v34  ;;  %v979_v39 = vunpack.c.l.bf16 %v1020_v33 }
  0xaf   :  { %v649_v36 = vsel %vm585_vm10, %v553_v25, %v617_v30  ;;  %v343_v45 = vmul.f32 %v988_v38, %v286_v32  ;;  %v980_v38 = vunpack.c.h.bf16 %v1020_v33  ;;  %v1018_v33 = vld [vmem:[%s1470_s1 + $0x40] sm:$0xff]  }
  0xb0   :  { %v675_v37 = vpack.c.bf16 %v649_v36, %v648_v35 }
  0xb1   :  { %v201_v42 = vpop.permute.xlu0 %200 }
  0xb2   :  { %v206_v41 = vpop.permute.xlu1 %205  ;;  %1032 = vmatpush3.bf16.msra.mxu0 %v675_v37  ;;  %1065 = vmatpush3.bf16.msra.mxu1 %v675_v37  ;;  %v326_v52 = vmul.f32 %v955_v44, %v201_v42  ;;  %v947_v44 = vunpack.c.l.bf16 %v1012_v40 }
  0xb3   :  { %v327_v51 = vmul.f32 %v956_v43, %v206_v41  ;;  %v948_v43 = vunpack.c.h.bf16 %v1012_v40  ;;  %v938_v40 = vld [vmem:[%s1470_s1] sm:$0xff]  }
  0xb5   :  { %v505_v48 = vpop.permute.xlu0 %504 }
  0xb6   :  { %v510_v47 = vpop.permute.xlu1 %509  ;;  %v566_v50 = vadd.f32 %v505_v48, %v342_v46 }
  0xb7   :  { %v567_v49 = vadd.f32 %v510_v47, %v343_v45 }
  0xb8   :  { %vm598_vm13 = vcmp.gt.f32.partialorder %v566_v50, 0.0  ;;  %v630_v54 = vmul.f32 0.2, %v566_v50 }
  0xb9   :  { %vm599_vm12 = vcmp.gt.f32.partialorder %v567_v49, 0.0  ;;  %v631_v53 = vmul.f32 0.2, %v567_v49  ;;  %v425_v56 = vpop.permute.xlu0 %424 }
  0xba   :  { %v430_v55 = vpop.permute.xlu1 %429  ;;  %v550_v58 = vadd.f32 %v425_v56, %v326_v52  ;;  %v662_v59 = vsel %vm598_vm13, %v566_v50, %v630_v54 }
  0xbb   :  { %v551_v57 = vadd.f32 %v430_v55, %v327_v51  ;;  %v663_v60 = vsel %vm599_vm12, %v567_v49, %v631_v53 }
  0xbc   :  { %v682_v61 = vpack.c.bf16 %v663_v60, %v662_v59  ;;  %vm582_vm15 = vcmp.gt.f32.partialorder %v550_v58, 0.0  ;;  %v614_v63 = vmul.f32 0.2, %v550_v58 }
  0xbd   :  { %vm583_vm14 = vcmp.gt.f32.partialorder %v551_v57, 0.0  ;;  %v615_v62 = vmul.f32 0.2, %v551_v57  ;;  %v271_v2 = vpop.permute.xlu0 %270 }
  0xbe   :  { %v276_v0 = vpop.permute.xlu1 %275  ;;  %1033 = vmatprep.subr.bf16.mxu0 %v682_v61  ;;  %1058 = vmatprep.subr.bf16.mxu1 %v682_v61  ;;  %v646_v3 = vsel %vm582_vm15, %v550_v58, %v614_v63  ;;  %v340_v14 = vmul.f32 %v983_v7, %v271_v2  ;;  %v975_v7 = vunpack.c.l.bf16 %v1019_v1 }
  0xbf   :  { %v647_v4 = vsel %vm583_vm14, %v551_v57, %v615_v62  ;;  %v341_v13 = vmul.f32 %v984_v6, %v276_v0  ;;  %v976_v6 = vunpack.c.h.bf16 %v1019_v1 }
  0xc0   :  { %v674_v5 = vpack.c.bf16 %v647_v4, %v646_v3 }
  0xc1   :  { %v191_v10 = vpop.permute.xlu0 %190 }
  0xc2   :  { %v196_v9 = vpop.permute.xlu1 %195  ;;  %1034 = vmatpush3.bf16.msra.mxu0 %v674_v5  ;;  %1066 = vmatpush3.bf16.msra.mxu1 %v674_v5  ;;  %v324_v20 = vmul.f32 %v951_v12, %v191_v10  ;;  %v943_v12 = vunpack.c.l.bf16 %v1011_v8 }
  0xc3   :  { %v325_v19 = vmul.f32 %v952_v11, %v196_v9  ;;  %v944_v11 = vunpack.c.h.bf16 %v1011_v8 }
  0xc5   :  { %v495_v16 = vpop.permute.xlu0 %494 }
  0xc6   :  { %v500_v15 = vpop.permute.xlu1 %499  ;;  %v564_v18 = vadd.f32 %v495_v16, %v340_v14 }
  0xc7   :  { %v565_v17 = vadd.f32 %v500_v15, %v341_v13 }
  0xc8   :  { %vm596_vm1 = vcmp.gt.f32.partialorder %v564_v18, 0.0  ;;  %v628_v22 = vmul.f32 0.2, %v564_v18 }
  0xc9   :  { %vm597_vm0 = vcmp.gt.f32.partialorder %v565_v17, 0.0  ;;  %v629_v21 = vmul.f32 0.2, %v565_v17  ;;  %v415_v24 = vpop.permute.xlu0 %414 }
  0xca   :  { %v420_v23 = vpop.permute.xlu1 %419  ;;  %v548_v26 = vadd.f32 %v415_v24, %v324_v20  ;;  %v660_v27 = vsel %vm596_vm1, %v564_v18, %v628_v22 }
  0xcb   :  { %v549_v25 = vadd.f32 %v420_v23, %v325_v19  ;;  %v661_v28 = vsel %vm597_vm0, %v565_v17, %v629_v21  ;;  %vm53_vm0 = vcmask 7168  }
  0xcc   :  { %v681_v29 = vpack.c.bf16 %v661_v28, %v660_v27  ;;  %vm580_vm3 = vcmp.gt.f32.partialorder %v548_v26, 0.0  ;;  %v612_v31 = vmul.f32 0.2, %v548_v26 }
  0xcd   :  { %vm581_vm2 = vcmp.gt.f32.partialorder %v549_v25, 0.0  ;;  %v613_v30 = vmul.f32 0.2, %v549_v25  ;;  %v261_v34 = vpop.permute.xlu0 %260 }
  0xce   :  { %v266_v32 = vpop.permute.xlu1 %265  ;;  %1035 = vmatprep.subr.bf16.mxu0 %v681_v29  ;;  %1059 = vmatprep.subr.bf16.mxu1 %v681_v29  ;;  %v644_v35 = vsel %vm580_vm3, %v548_v26, %v612_v31  ;;  %v338_v46 = vmul.f32 %v979_v39, %v261_v34  ;;  %v971_v39 = vunpack.c.l.bf16 %v1018_v33 }
  0xcf   :  { %v645_v36 = vsel %vm581_vm2, %v549_v25, %v613_v30  ;;  %v339_v45 = vmul.f32 %v980_v38, %v266_v32  ;;  %v972_v38 = vunpack.c.h.bf16 %v1018_v33 }
  0xd0   :  { %v673_v37 = vpack.c.bf16 %v645_v36, %v644_v35 }
  0xd1   :  { %v181_v42 = vpop.permute.xlu0 %180 }
  0xd2   :  { %v186_v41 = vpop.permute.xlu1 %185  ;;  %1036 = vmatpush3.bf16.msra.mxu0 %v673_v37  ;;  %1067 = vmatpush3.bf16.msra.mxu1 %v673_v37  ;;  %v322_v52 = vmul.f32 %v947_v44, %v181_v42  ;;  %v939_v44 = vunpack.c.l.bf16 %v938_v40 }
  0xd3   :  { %v323_v51 = vmul.f32 %v948_v43, %v186_v41  ;;  %v940_v43 = vunpack.c.h.bf16 %v938_v40 }
  0xd5   :  { %v485_v48 = vpop.permute.xlu0 %484 }
  0xd6   :  { %v490_v47 = vpop.permute.xlu1 %489  ;;  %v562_v50 = vadd.f32 %v485_v48, %v338_v46 }
  0xd7   :  { %v563_v49 = vadd.f32 %v490_v47, %v339_v45 }
  0xd8   :  { %vm594_vm5 = vcmp.gt.f32.partialorder %v562_v50, 0.0  ;;  %v626_v54 = vmul.f32 0.2, %v562_v50 }
  0xd9   :  { %vm595_vm4 = vcmp.gt.f32.partialorder %v563_v49, 0.0  ;;  %v627_v53 = vmul.f32 0.2, %v563_v49  ;;  %v405_v56 = vpop.permute.xlu0 %404 }
  0xda   :  { %v410_v55 = vpop.permute.xlu1 %409  ;;  %v546_v58 = vadd.f32 %v405_v56, %v322_v52  ;;  %v658_v59 = vsel %vm594_vm5, %v562_v50, %v626_v54 }
  0xdb   :  { %v547_v57 = vadd.f32 %v410_v55, %v323_v51  ;;  %v659_v60 = vsel %vm595_vm4, %v563_v49, %v627_v53 }
  0xdc   :  { %v680_v61 = vpack.c.bf16 %v659_v60, %v658_v59  ;;  %vm578_vm7 = vcmp.gt.f32.partialorder %v546_v58, 0.0  ;;  %v610_v63 = vmul.f32 0.2, %v546_v58 }
  0xdd   :  { %vm579_vm6 = vcmp.gt.f32.partialorder %v547_v57, 0.0  ;;  %v611_v62 = vmul.f32 0.2, %v547_v57  ;;  %v251_v2 = vpop.permute.xlu0 %250 }
  0xde   :  { %v256_v0 = vpop.permute.xlu1 %255  ;;  %1037 = vmatprep.subr.bf16.mxu0 %v680_v61  ;;  %1060 = vmatprep.subr.bf16.mxu1 %v680_v61  ;;  %v642_v3 = vsel %vm578_vm7, %v546_v58, %v610_v63  ;;  %v336_v14 = vmul.f32 %v975_v7, %v251_v2 }
  0xdf   :  { %v643_v4 = vsel %vm579_vm6, %v547_v57, %v611_v62  ;;  %v337_v13 = vmul.f32 %v976_v6, %v256_v0  ;;  %v784_v6 = vlaneseq }
  0xe0   :  { %v672_v5 = vpack.c.bf16 %v643_v4, %v642_v3  ;;  %v1075_v3 = vld [vmem:[%s1471_s0] ss:$8 sps:$4 sm:$0xff]   ;;  %v1078_v4 = vld [vmem:[%s1471_s0 + $0x10] ss:$8 sps:$4 sm:$0xff]  }
  0xe1   :  { %v171_v10 = vpop.permute.xlu0 %170  ;;  %v785_v7 = vand.u32 127, %v784_v6 }
  0xe2   :  { %v176_v9 = vpop.permute.xlu1 %175  ;;  %1038 = vmatpush3.bf16.msra.mxu0 %v672_v5  ;;  %1068 = vmatpush3.bf16.msra.mxu1 %v672_v5  ;;  %v320_v20 = vmul.f32 %v943_v12, %v171_v10  ;;  %v1082_v5 = vmov 0.0  }
  0xe3   :  { %v321_v19 = vmul.f32 %v944_v11, %v176_v9  ;;  %54 = vst.msk [vmem:[%s1472_s5] sm:$0xff] %vm53_vm0, %v1082_v5  ;;  %55 = vst.msk [vmem:[%s1472_s5 + $0x8] sm:$0xff] %vm53_vm0, %v1082_v5  ;;  %vm790_vm1 = vcmp.lt.s32.totalorder %v785_v7, 50 }
  0xe4   :  { %56 = vst.msk [vmem:[%s1472_s5 + $0x10] sm:$0xff] %vm53_vm0, %v1082_v5  ;;  %57 = vst.msk [vmem:[%s1472_s5 + $0x18] sm:$0xff] %vm53_vm0, %v1082_v5 }
  0xe5   :  { %v475_v16 = vpop.permute.xlu0 %474  ;;  %58 = vst.msk [vmem:[%s1474_s6] sm:$0xff] %vm53_vm0, %v1082_v5  ;;  %59 = vst.msk [vmem:[%s1474_s6 + $0x8] sm:$0xff] %vm53_vm0, %v1082_v5 }
  0xe6   :  { %v480_v15 = vpop.permute.xlu1 %479  ;;  %v560_v18 = vadd.f32 %v475_v16, %v336_v14  ;;  %60 = vst.msk [vmem:[%s1474_s6 + $0x10] sm:$0xff] %vm53_vm0, %v1082_v5  ;;  %61 = vst.msk [vmem:[%s1474_s6 + $0x18] sm:$0xff] %vm53_vm0, %v1082_v5 }
  0xe7   :  { %v561_v17 = vadd.f32 %v480_v15, %v337_v13 }
  0xe8   :  { %vm592_vm9 = vcmp.gt.f32.partialorder %v560_v18, 0.0  ;;  %v624_v22 = vmul.f32 0.2, %v560_v18 }
  0xe9   :  { %vm593_vm8 = vcmp.gt.f32.partialorder %v561_v17, 0.0  ;;  %v625_v21 = vmul.f32 0.2, %v561_v17  ;;  %v395_v24 = vpop.permute.xlu0 %394 }
  0xea   :  { %v400_v23 = vpop.permute.xlu1 %399  ;;  %v544_v26 = vadd.f32 %v395_v24, %v320_v20  ;;  %v656_v27 = vsel %vm592_vm9, %v560_v18, %v624_v22 }
  0xeb   :  { %v545_v25 = vadd.f32 %v400_v23, %v321_v19  ;;  %v657_v28 = vsel %vm593_vm8, %v561_v17, %v625_v21 }
  0xec   :  { %v679_v29 = vpack.c.bf16 %v657_v28, %v656_v27  ;;  %vm576_vm11 = vcmp.gt.f32.partialorder %v544_v26, 0.0  ;;  %v608_v31 = vmul.f32 0.2, %v544_v26 }
  0xed   :  { %vm577_vm10 = vcmp.gt.f32.partialorder %v545_v25, 0.0  ;;  %v609_v30 = vmul.f32 0.2, %v545_v25  ;;  %v241_v34 = vpop.permute.xlu0 %240 }
  0xee   :  { %v246_v32 = vpop.permute.xlu1 %245  ;;  %1039 = vmatprep.subr.bf16.mxu0 %v679_v29  ;;  %1061 = vmatprep.subr.bf16.mxu1 %v679_v29  ;;  %v640_v35 = vsel %vm576_vm11, %v544_v26, %v608_v31  ;;  %v334_v46 = vmul.f32 %v971_v39, %v241_v34 }
  0xef   :  { %v641_v36 = vsel %vm577_vm10, %v545_v25, %v609_v30  ;;  %v335_v45 = vmul.f32 %v972_v38, %v246_v32  ;;  %v795_v30 = vld [vmem:[%s1472_s5] sm:$0xff]  ;;  %v796_v38 = vld [vmem:[%s1472_s5 + $0x8] sm:$0xff] }
  0xf0   :  { %v671_v37 = vpack.c.bf16 %v641_v36, %v640_v35  ;;  %v816_v32 = vld [vmem:[%s1474_s6] sm:$0xff]  ;;  %v797_v35 = vld [vmem:[%s1472_s5 + $0x10] sm:$0xff] }
  0xf1   :  { %v161_v42 = vpop.permute.xlu0 %160 }
  0xf2   :  { %v166_v41 = vpop.permute.xlu1 %165  ;;  %1040 = vmatpush3.bf16.msra.mxu0 %v671_v37  ;;  %1069 = vmatpush3.bf16.msra.mxu1 %v671_v37  ;;  %v318_v52 = vmul.f32 %v939_v44, %v161_v42  ;;  %v818_v44 = vld [vmem:[%s1474_s6 + $0x10] sm:$0xff] }
  0xf3   :  { %v319_v51 = vmul.f32 %v940_v43, %v166_v41  ;;  %v798_v41 = vld [vmem:[%s1472_s5 + $0x18] sm:$0xff] }
  0xf5   :  { %v465_v48 = vpop.permute.xlu0 %464 }
  0xf6   :  { %v470_v47 = vpop.permute.xlu1 %469  ;;  %v558_v50 = vadd.f32 %v465_v48, %v334_v46 }
  0xf7   :  { %v559_v49 = vadd.f32 %v470_v47, %v335_v45  ;;  %v817_v47 = vld [vmem:[%s1474_s6 + $0x8] sm:$0xff] }
  0xf8   :  { %vm590_vm13 = vcmp.gt.f32.partialorder %v558_v50, 0.0  ;;  %v622_v54 = vmul.f32 0.2, %v558_v50 }
  0xf9   :  { %vm591_vm12 = vcmp.gt.f32.partialorder %v559_v49, 0.0  ;;  %v623_v53 = vmul.f32 0.2, %v559_v49  ;;  %v385_v56 = vpop.permute.xlu0 %384 }
  0xfa   :  { %v390_v55 = vpop.permute.xlu1 %389  ;;  %v542_v58 = vadd.f32 %v385_v56, %v318_v52  ;;  %v654_v59 = vsel %vm590_vm13, %v558_v50, %v622_v54 }
  0xfb   :  { %v543_v57 = vadd.f32 %v390_v55, %v319_v51  ;;  %v655_v60 = vsel %vm591_vm12, %v559_v49, %v623_v53  ;;  %v819_v51 = vld [vmem:[%s1474_s6 + $0x18] sm:$0xff] }
  0xfc   :  { %v678_v61 = vpack.c.bf16 %v655_v60, %v654_v59  ;;  %vm574_vm15 = vcmp.gt.f32.partialorder %v542_v58, 0.0  ;;  %v606_v63 = vmul.f32 0.2, %v542_v58 }
  0xfd   :  { %vm575_vm14 = vcmp.gt.f32.partialorder %v543_v57, 0.0  ;;  %v607_v62 = vmul.f32 0.2, %v543_v57 }
  0xfe   :  { %1041 = vmatprep.subr.bf16.mxu0 %v678_v61  ;;  %1062 = vmatprep.subr.bf16.mxu1 %v678_v61  ;;  %v638_v0 = vsel %vm574_vm15, %v542_v58, %v606_v63 }
  0xff   :  { %v639_v1 = vsel %vm575_vm14, %v543_v57, %v607_v62 }
 0x100   :  { %v670_v2 = vpack.c.bf16 %v639_v1, %v638_v0 }
 0x102   :  { %1042 = vmatpush3.bf16.msra.mxu0 %v670_v2  ;;  %1070 = vmatpush3.bf16.msra.mxu1 %v670_v2 }
 0x105   :  { %743 = vmatmul.mubr.bf16.vlgmr.msra.gmra.mxu0 %v1075_v3  ;;  %751 = vmatmul.mubr.bf16.vlgmr.msra.gmra.mxu1 %v1078_v4 }
 0x1c5   :  { %v1043_v8 = vpop.f32.mrf.mxu0  ;;  %v1049_v9 = vpop.f32.mrf.mxu1 }
 0x1c7   :  { %v1044_v10 = vpop.f32.mrf.mxu0  ;;  %v1050_v11 = vpop.f32.mrf.mxu1 }
 0x1c8   :  { %v1045_v12 = vadd.f32 %v1044_v10, %v1043_v8  ;;  %v1051_v15 = vadd.f32 %v1050_v11, %v1049_v9 }
 0x1c9   :  { %v1046_v13 = vpop.f32.mrf.mxu0  ;;  %v1052_v14 = vpop.f32.mrf.mxu1 }
 0x1ca   :  { %v791_v16 = vsel %vm790_vm1, %v1045_v12, 0.0  ;;  %v793_v24 = vsel %vm790_vm1, %v1051_v15, 0.0 }
 0x1cb   :  { %v1047_v17 = vpop.f32.mrf.mxu0  ;;  %v1053_v18 = vpop.f32.mrf.mxu1  ;;  %799 = vadd.xlane.f32.xlu0 %v791_v16  ;;  %v820_v19 = vmul.f32 %v791_v16, %v791_v16  ;;  %v822_v27 = vmul.f32 %v793_v24, %v793_v24 }
 0x1cc   :  { %v1048_v20 = vadd.f32 %v1047_v17, %v1046_v13  ;;  %v1054_v21 = vadd.f32 %v1053_v18, %v1052_v14 }
 0x1cd   :  { %824 = vadd.xlane.f32.xlu1 %v820_v19 }
 0x1ce   :  { %v1004_v22 = vpack.c.bf16 %v1048_v20, %v1045_v12  ;;  %v1009_v23 = vpack.c.bf16 %v1054_v21, %v1051_v15  ;;  %v792_v25 = vsel %vm790_vm1, %v1048_v20, 0.0  ;;  %v794_v26 = vsel %vm790_vm1, %v1054_v21, 0.0 }
 0x1cf   :  { %803 = vadd.xlane.f32.xlu0 %v793_v24  ;;  %v821_v28 = vmul.f32 %v792_v25, %v792_v25  ;;  %v823_v29 = vmul.f32 %v794_v26, %v794_v26 }
 0x1d0   :  { %1005 = vst [vmem:[%s1473_s4] sm:$0xff] %v1004_v22   ;;  %1026 = vst [vmem:[%s1473_s4 + $0x8] sm:$0xff] %v1009_v23  }
 0x1d1   :  { %801 = vadd.xlane.f32.xlu1 %v792_v25 }
 0x1d3   :  { %805 = vadd.xlane.f32.xlu0 %v794_v26 }
 0x1d5   :  { %828 = vadd.xlane.f32.xlu1 %v822_v27 }
 0x1d7   :  { %826 = vadd.xlane.f32.xlu0 %v821_v28 }
 0x1db   :  { %830 = vadd.xlane.f32.xlu0 %v823_v29 }
 0x254   :  { %v800_v31 = vpop.xlane.xlu0 %799 }
 0x255   :  { %v807_v33 = vadd.f32 %v800_v31, %v795_v30 }
 0x256   :  { %v825_v34 = vpop.xlane.xlu1 %824 }
 0x257   :  { %812 = vst.msk [vmem:[%s1472_s5] sm:$0xff] %vm53_vm0, %v807_v33  ;;  %v832_v36 = vadd.f32 %v825_v34, %v816_v32 }
 0x258   :  { %v804_v37 = vpop.xlane.xlu0 %803 }
 0x259   :  { %836 = vst.msk [vmem:[%s1474_s6] sm:$0xff] %vm53_vm0, %v832_v36  ;;  %v809_v39 = vadd.f32 %v804_v37, %v797_v35 }
 0x25a   :  { %v802_v40 = vpop.xlane.xlu1 %801 }
 0x25b   :  { %814 = vst.msk [vmem:[%s1472_s5 + $0x10] sm:$0xff] %vm53_vm0, %v809_v39  ;;  %v808_v42 = vadd.f32 %v802_v40, %v796_v38 }
 0x25c   :  { %v806_v43 = vpop.xlane.xlu0 %805 }
 0x25d   :  { %813 = vst.msk [vmem:[%s1472_s5 + $0x8] sm:$0xff] %vm53_vm0, %v808_v42  ;;  %v810_v45 = vadd.f32 %v806_v43, %v798_v41 }
 0x25e   :  { %v829_v46 = vpop.xlane.xlu1 %828 }
 0x25f   :  { %815 = vst.msk [vmem:[%s1472_s5 + $0x18] sm:$0xff] %vm53_vm0, %v810_v45  ;;  %v834_v48 = vadd.f32 %v829_v46, %v818_v44 }
 0x260   :  { %v827_v49 = vpop.xlane.xlu0 %826 }
 0x261   :  { %838 = vst.msk [vmem:[%s1474_s6 + $0x10] sm:$0xff] %vm53_vm0, %v834_v48  ;;  %v833_v50 = vadd.f32 %v827_v49, %v817_v47 }
 0x263   :  { %837 = vst.msk [vmem:[%s1474_s6 + $0x8] sm:$0xff] %vm53_vm0, %v833_v50 }
 0x264   :  { %v831_v52 = vpop.xlane.xlu0 %830 }
 0x265   :  { %v835_v53 = vadd.f32 %v831_v52, %v819_v51 }
 0x267   :  { %839 = vst.msk [vmem:[%s1474_s6 + $0x18] sm:$0xff] %vm53_vm0, %v835_v53 }

// kernel: discriminator_forward.5
= control target key start
LH: loop header
LB: loop body
LE: loop exit
PB: predicated region body
PF: predicated region fallthrough
CT: control target
= control target key end

     0   :  { %v1609_v0 = vmov 0   ;;  %s2306_s2 = inlined_call_operand.vmem [shape: f32[512,1], index: 2, kind: input, shape index: {}]   ;;  %s2307_s3 = inlined_call_operand.vmem [shape: f32[512,1], index: 3, kind: input, shape index: {}]   ;;  %s2308_s1 = inlined_call_operand.vmem [shape: bf16[512,128], index: 1, kind: input, shape index: {}]   ;;  %s2309_s0 = inlined_call_operand.vmem [shape: bf16[16,512], index: 0, kind: input, shape index: {}]   ;;  %s2310_s4 = inlined_call_operand.vmem [shape: f32[16,1], index: 4, kind: input, shape index: {}]   ;;  %s2311_s5 = inlined_call_operand.vmem [shape: f32[16,128], index: 5, kind: output, shape index: {}]  }
   0x1   :  { %1602 = vset.pattern.permute.xlu1 %v1609_v0  ;;  %1601 = vset.pattern.permute.xlu0 %v1609_v0  ;;  %v151_v1 = vld [vmem:[%s2306_s2 + $0x10] sm:$0xff]  ;;  %v149_v2 = vld [vmem:[%s2306_s2] sm:$0xff]  ;;  %v152_v3 = vld [vmem:[%s2306_s2 + $0x18] sm:$0xff] }
   0x2   :  { %225 = vperm.xlu1 %1602, %v151_v1   ;;  %215 = vperm.xlu0 %1601, %v149_v2   ;;  %v150_v4 = vld [vmem:[%s2306_s2 + $0x8] sm:$0xff]  ;;  %v153_v6 = vld [vmem:[%s2306_s2 + $0x20] sm:$0xff]  ;;  %v156_v7 = vld [vmem:[%s2306_s2 + $0x38] sm:$0xff] }
   0x3   :  { %v154_v5 = vld [vmem:[%s2306_s2 + $0x28] sm:$0xff]  ;;  %v155_v8 = vld [vmem:[%s2306_s2 + $0x30] sm:$0xff]  ;;  %v157_v10 = vld [vmem:[%s2306_s2 + $0x40] sm:$0xff] }
   0x4   :  { %v158_v9 = vld [vmem:[%s2306_s2 + $0x48] sm:$0xff]  ;;  %v160_v11 = vld [vmem:[%s2306_s2 + $0x58] sm:$0xff]  ;;  %v159_v12 = vld [vmem:[%s2306_s2 + $0x50] sm:$0xff] }
   0x5   :  { %v162_v13 = vld [vmem:[%s2306_s2 + $0x68] sm:$0xff]  ;;  %v161_v14 = vld [vmem:[%s2306_s2 + $0x60] sm:$0xff]  ;;  %v164_v15 = vld [vmem:[%s2306_s2 + $0x78] sm:$0xff] }
   0x6   :  { %230 = vperm.xlu1 %1602, %v152_v3   ;;  %220 = vperm.xlu0 %1601, %v150_v4   ;;  %v163_v16 = vld [vmem:[%s2306_s2 + $0x70] sm:$0xff]  ;;  %v166_v17 = vld [vmem:[%s2306_s2 + $0x88] sm:$0xff]  ;;  %v165_v18 = vld [vmem:[%s2306_s2 + $0x80] sm:$0xff] }
   0x7   :  { %v168_v19 = vld [vmem:[%s2306_s2 + $0x98] sm:$0xff]  ;;  %v167_v20 = vld [vmem:[%s2306_s2 + $0x90] sm:$0xff]  ;;  %v170_v21 = vld [vmem:[%s2306_s2 + $0xa8] sm:$0xff] }
   0x8   :  { %v169_v22 = vld [vmem:[%s2306_s2 + $0xa0] sm:$0xff]  ;;  %v172_v23 = vld [vmem:[%s2306_s2 + $0xb8] sm:$0xff]  ;;  %v171_v24 = vld [vmem:[%s2306_s2 + $0xb0] sm:$0xff] }
   0x9   :  { %v174_v25 = vld [vmem:[%s2306_s2 + $0xc8] sm:$0xff]  ;;  %v173_v26 = vld [vmem:[%s2306_s2 + $0xc0] sm:$0xff]  ;;  %v176_v27 = vld [vmem:[%s2306_s2 + $0xd8] sm:$0xff] }
   0xa   :  { %240 = vperm.xlu1 %1602, %v154_v5   ;;  %235 = vperm.xlu0 %1601, %v153_v6   ;;  %v175_v28 = vld [vmem:[%s2306_s2 + $0xd0] sm:$0xff]  ;;  %v178_v29 = vld [vmem:[%s2306_s2 + $0xe8] sm:$0xff]  ;;  %v177_v30 = vld [vmem:[%s2306_s2 + $0xe0] sm:$0xff] }
   0xb   :  { %v180_v31 = vld [vmem:[%s2306_s2 + $0xf8] sm:$0xff]  ;;  %v179_v32 = vld [vmem:[%s2306_s2 + $0xf0] sm:$0xff]  ;;  %v182_v33 = vld [vmem:[%s2306_s2 + $0x108] sm:$0xff] }
   0xc   :  { %v181_v34 = vld [vmem:[%s2306_s2 + $0x100] sm:$0xff]  ;;  %v184_v35 = vld [vmem:[%s2306_s2 + $0x118] sm:$0xff]  ;;  %v183_v36 = vld [vmem:[%s2306_s2 + $0x110] sm:$0xff] }
   0xd   :  { %v186_v37 = vld [vmem:[%s2306_s2 + $0x128] sm:$0xff]  ;;  %v185_v38 = vld [vmem:[%s2306_s2 + $0x120] sm:$0xff]  ;;  %v188_v39 = vld [vmem:[%s2306_s2 + $0x138] sm:$0xff] }
   0xe   :  { %250 = vperm.xlu1 %1602, %v156_v7   ;;  %245 = vperm.xlu0 %1601, %v155_v8   ;;  %v187_v40 = vld [vmem:[%s2306_s2 + $0x130] sm:$0xff]  ;;  %v190_v41 = vld [vmem:[%s2306_s2 + $0x148] sm:$0xff]  ;;  %v189_v42 = vld [vmem:[%s2306_s2 + $0x140] sm:$0xff] }
   0xf   :  { %v192_v43 = vld [vmem:[%s2306_s2 + $0x158] sm:$0xff]  ;;  %v191_v44 = vld [vmem:[%s2306_s2 + $0x150] sm:$0xff]  ;;  %v194_v45 = vld [vmem:[%s2306_s2 + $0x168] sm:$0xff] }
  0x10   :  { %v193_v46 = vld [vmem:[%s2306_s2 + $0x160] sm:$0xff]  ;;  %v196_v47 = vld [vmem:[%s2306_s2 + $0x178] sm:$0xff]  ;;  %v195_v48 = vld [vmem:[%s2306_s2 + $0x170] sm:$0xff] }
  0x11   :  { %v198_v49 = vld [vmem:[%s2306_s2 + $0x188] sm:$0xff]  ;;  %v197_v50 = vld [vmem:[%s2306_s2 + $0x180] sm:$0xff]  ;;  %v200_v51 = vld [vmem:[%s2306_s2 + $0x198] sm:$0xff] }
  0x12   :  { %260 = vperm.xlu1 %1602, %v158_v9   ;;  %255 = vperm.xlu0 %1601, %v157_v10   ;;  %v199_v52 = vld [vmem:[%s2306_s2 + $0x190] sm:$0xff]  ;;  %v202_v53 = vld [vmem:[%s2306_s2 + $0x1a8] sm:$0xff]  ;;  %v201_v54 = vld [vmem:[%s2306_s2 + $0x1a0] sm:$0xff] }
  0x13   :  { %v212_v55 = vld [vmem:[%s2306_s2 + $0x1f8] sm:$0xff]  ;;  %v211_v56 = vld [vmem:[%s2306_s2 + $0x1f0] sm:$0xff]  ;;  %v210_v3 = vld [vmem:[%s2306_s2 + $0x1e8] sm:$0xff] }
  0x14   :  { %v628_v57 = vld [vmem:[%s2307_s3 + $0xf8] sm:$0xff]  ;;  %v627_v58 = vld [vmem:[%s2307_s3 + $0xf0] sm:$0xff]  ;;  %v209_v4 = vld [vmem:[%s2306_s2 + $0x1e0] sm:$0xff] }
  0x15   :  { %v612_v59 = vld [vmem:[%s2307_s3 + $0x78] sm:$0xff]  ;;  %v611_v60 = vld [vmem:[%s2307_s3 + $0x70] sm:$0xff]  ;;  %v626_v7 = vld [vmem:[%s2307_s3 + $0xe8] sm:$0xff] }
  0x16   :  { %270 = vperm.xlu1 %1602, %v160_v11   ;;  %265 = vperm.xlu0 %1601, %v159_v12   ;;  %v660_v61 = vld [vmem:[%s2307_s3 + $0x1f8] sm:$0xff]  ;;  %v659_v62 = vld [vmem:[%s2307_s3 + $0x1f0] sm:$0xff]  ;;  %v625_v8 = vld [vmem:[%s2307_s3 + $0xe0] sm:$0xff] }
  0x17   :  { %v644_v63 = vld [vmem:[%s2307_s3 + $0x178] sm:$0xff]  ;;  %v643_v0 = vld [vmem:[%s2307_s3 + $0x170] sm:$0xff]  ;;  %v610_v11 = vld [vmem:[%s2307_s3 + $0x68] sm:$0xff] }
  0x18   :  { %v609_v12 = vld [vmem:[%s2307_s3 + $0x60] sm:$0xff] }
  0x1a   :  { %280 = vperm.xlu1 %1602, %v162_v13   ;;  %275 = vperm.xlu0 %1601, %v161_v14  }
  0x1e   :  { %290 = vperm.xlu1 %1602, %v164_v15   ;;  %285 = vperm.xlu0 %1601, %v163_v16   ;;  %v658_v15 = vld [vmem:[%s2307_s3 + $0x1e8] sm:$0xff]  ;;  %v657_v16 = vld [vmem:[%s2307_s3 + $0x1e0] sm:$0xff] }
  0x22   :  { %300 = vperm.xlu1 %1602, %v166_v17   ;;  %295 = vperm.xlu0 %1601, %v165_v18  }
  0x26   :  { %310 = vperm.xlu1 %1602, %v168_v19   ;;  %305 = vperm.xlu0 %1601, %v167_v20   ;;  %v642_v19 = vld [vmem:[%s2307_s3 + $0x168] sm:$0xff]  ;;  %v641_v20 = vld [vmem:[%s2307_s3 + $0x160] sm:$0xff] }
  0x2a   :  { %320 = vperm.xlu1 %1602, %v170_v21   ;;  %315 = vperm.xlu0 %1601, %v169_v22  }
  0x2e   :  { %330 = vperm.xlu1 %1602, %v172_v23   ;;  %325 = vperm.xlu0 %1601, %v171_v24   ;;  %v208_v23 = vld [vmem:[%s2306_s2 + $0x1d8] sm:$0xff]  ;;  %v207_v24 = vld [vmem:[%s2306_s2 + $0x1d0] sm:$0xff] }
  0x32   :  { %340 = vperm.xlu1 %1602, %v174_v25   ;;  %335 = vperm.xlu0 %1601, %v173_v26  }
  0x36   :  { %350 = vperm.xlu1 %1602, %v176_v27   ;;  %345 = vperm.xlu0 %1601, %v175_v28   ;;  %v624_v27 = vld [vmem:[%s2307_s3 + $0xd8] sm:$0xff]  ;;  %v623_v28 = vld [vmem:[%s2307_s3 + $0xd0] sm:$0xff] }
  0x3a   :  { %360 = vperm.xlu1 %1602, %v178_v29   ;;  %355 = vperm.xlu0 %1601, %v177_v30  }
  0x3e   :  { %370 = vperm.xlu1 %1602, %v180_v31   ;;  %365 = vperm.xlu0 %1601, %v179_v32   ;;  %v608_v31 = vld [vmem:[%s2307_s3 + $0x58] sm:$0xff]  ;;  %v607_v32 = vld [vmem:[%s2307_s3 + $0x50] sm:$0xff] }
  0x42   :  { %380 = vperm.xlu1 %1602, %v182_v33   ;;  %375 = vperm.xlu0 %1601, %v181_v34  }
  0x46   :  { %390 = vperm.xlu1 %1602, %v184_v35   ;;  %385 = vperm.xlu0 %1601, %v183_v36   ;;  %v656_v35 = vld [vmem:[%s2307_s3 + $0x1d8] sm:$0xff]  ;;  %v655_v36 = vld [vmem:[%s2307_s3 + $0x1d0] sm:$0xff] }
  0x4a   :  { %400 = vperm.xlu1 %1602, %v186_v37   ;;  %395 = vperm.xlu0 %1601, %v185_v38  }
  0x4e   :  { %410 = vperm.xlu1 %1602, %v188_v39   ;;  %405 = vperm.xlu0 %1601, %v187_v40   ;;  %v640_v39 = vld [vmem:[%s2307_s3 + $0x158] sm:$0xff]  ;;  %v639_v40 = vld [vmem:[%s2307_s3 + $0x150] sm:$0xff] }
  0x52   :  { %420 = vperm.xlu1 %1602, %v190_v41   ;;  %415 = vperm.xlu0 %1601, %v189_v42  }
  0x56   :  { %430 = vperm.xlu1 %1602, %v192_v43   ;;  %425 = vperm.xlu0 %1601, %v191_v44   ;;  %v206_v43 = vld [vmem:[%s2306_s2 + $0x1c8] sm:$0xff]  ;;  %v205_v44 = vld [vmem:[%s2306_s2 + $0x1c0] sm:$0xff] }
  0x5a   :  { %440 = vperm.xlu1 %1602, %v194_v45   ;;  %435 = vperm.xlu0 %1601, %v193_v46  }
  0x5e   :  { %450 = vperm.xlu1 %1602, %v196_v47   ;;  %445 = vperm.xlu0 %1601, %v195_v48   ;;  %v622_v47 = vld [vmem:[%s2307_s3 + $0xc8] sm:$0xff]  ;;  %v621_v48 = vld [vmem:[%s2307_s3 + $0xc0] sm:$0xff] }
  0x62   :  { %460 = vperm.xlu1 %1602, %v198_v49   ;;  %455 = vperm.xlu0 %1601, %v197_v50  }
  0x66   :  { %470 = vperm.xlu1 %1602, %v200_v51   ;;  %465 = vperm.xlu0 %1601, %v199_v52   ;;  %v606_v51 = vld [vmem:[%s2307_s3 + $0x48] sm:$0xff]  ;;  %v605_v52 = vld [vmem:[%s2307_s3 + $0x40] sm:$0xff] }
  0x6a   :  { %480 = vperm.xlu1 %1602, %v202_v53   ;;  %475 = vperm.xlu0 %1601, %v201_v54  }
  0x6e   :  { %530 = vperm.xlu1 %1602, %v212_v55   ;;  %525 = vperm.xlu0 %1601, %v211_v56   ;;  %v654_v55 = vld [vmem:[%s2307_s3 + $0x1c8] sm:$0xff]  ;;  %v653_v56 = vld [vmem:[%s2307_s3 + $0x1c0] sm:$0xff] }
  0x72   :  { %818 = vperm.xlu1 %1602, %v628_v57   ;;  %813 = vperm.xlu0 %1601, %v627_v58  }
  0x76   :  { %738 = vperm.xlu1 %1602, %v612_v59   ;;  %733 = vperm.xlu0 %1601, %v611_v60   ;;  %v638_v59 = vld [vmem:[%s2307_s3 + $0x148] sm:$0xff]  ;;  %v637_v60 = vld [vmem:[%s2307_s3 + $0x140] sm:$0xff] }
  0x7a   :  { %978 = vperm.xlu1 %1602, %v660_v61   ;;  %973 = vperm.xlu0 %1601, %v659_v62  }
  0x7d   :  { %v1832_v1 = vpop.permute.xlu1 %225  ;;  %v1834_v2 = vpop.permute.xlu0 %215 }
  0x7e   :  { %2312 = vst [vmem:[#allocation2_spill] sm:$0xff] %v1832_v1  ;;  %2313 = vst [vmem:[#allocation3_spill] sm:$0xff] %v1834_v2  ;;  %898 = vperm.xlu1 %1602, %v644_v63   ;;  %893 = vperm.xlu0 %1601, %v643_v0   ;;  %v204_v63 = vld [vmem:[%s2306_s2 + $0x1b8] sm:$0xff]  ;;  %v203_v0 = vld [vmem:[%s2306_s2 + $0x1b0] sm:$0xff] }
  0x7f   :  { %v597_v1 = vld [vmem:[%s2307_s3] sm:$0xff] }
  0x81   :  { %v1842_v5 = vpop.permute.xlu1 %230  ;;  %v1844_v6 = vpop.permute.xlu0 %220 }
  0x82   :  { %2314 = vst [vmem:[#allocation4_spill] sm:$0xff] %v1842_v5  ;;  %2315 = vst [vmem:[#allocation5_spill] sm:$0xff] %v1844_v6  ;;  %520 = vperm.xlu1 %1602, %v210_v3   ;;  %515 = vperm.xlu0 %1601, %v209_v4  }
  0x85   :  { %v1852_v9 = vpop.permute.xlu1 %240  ;;  %v1854_v10 = vpop.permute.xlu0 %235 }
  0x86   :  { %808 = vperm.xlu1 %1602, %v626_v7   ;;  %803 = vperm.xlu0 %1601, %v625_v8   ;;  %v620_v7 = vld [vmem:[%s2307_s3 + $0xb8] sm:$0xff]  ;;  %v619_v8 = vld [vmem:[%s2307_s3 + $0xb0] sm:$0xff] }
  0x89   :  { %v1862_v13 = vpop.permute.xlu1 %250  ;;  %v1864_v14 = vpop.permute.xlu0 %245 }
  0x8a   :  { %728 = vperm.xlu1 %1602, %v610_v11   ;;  %723 = vperm.xlu0 %1601, %v609_v12  }
  0x8d   :  { %v1872_v17 = vpop.permute.xlu1 %260  ;;  %v1874_v18 = vpop.permute.xlu0 %255 }
  0x8e   :  { %968 = vperm.xlu1 %1602, %v658_v15   ;;  %963 = vperm.xlu0 %1601, %v657_v16   ;;  %v604_v15 = vld [vmem:[%s2307_s3 + $0x38] sm:$0xff]  ;;  %v603_v16 = vld [vmem:[%s2307_s3 + $0x30] sm:$0xff] }
  0x91   :  { %v1882_v21 = vpop.permute.xlu1 %270  ;;  %v1884_v22 = vpop.permute.xlu0 %265 }
  0x92   :  { %888 = vperm.xlu1 %1602, %v642_v19   ;;  %883 = vperm.xlu0 %1601, %v641_v20  }
  0x95   :  { %v1892_v25 = vpop.permute.xlu1 %280  ;;  %v1894_v26 = vpop.permute.xlu0 %275 }
  0x96   :  { %510 = vperm.xlu1 %1602, %v208_v23   ;;  %505 = vperm.xlu0 %1601, %v207_v24   ;;  %v652_v23 = vld [vmem:[%s2307_s3 + $0x1b8] sm:$0xff]  ;;  %v651_v24 = vld [vmem:[%s2307_s3 + $0x1b0] sm:$0xff] }
  0x99   :  { %v1902_v29 = vpop.permute.xlu1 %290  ;;  %v1904_v30 = vpop.permute.xlu0 %285 }
  0x9a   :  { %798 = vperm.xlu1 %1602, %v624_v27   ;;  %793 = vperm.xlu0 %1601, %v623_v28  }
  0x9d   :  { %v1912_v33 = vpop.permute.xlu1 %300  ;;  %v1914_v34 = vpop.permute.xlu0 %295 }
  0x9e   :  { %2316 = vst [vmem:[#allocation6_spill] sm:$0xff] %v1912_v33  ;;  %2317 = vst [vmem:[#allocation7_spill] sm:$0xff] %v1914_v34  ;;  %718 = vperm.xlu1 %1602, %v608_v31   ;;  %713 = vperm.xlu0 %1601, %v607_v32   ;;  %v636_v31 = vld [vmem:[%s2307_s3 + $0x138] sm:$0xff]  ;;  %v635_v32 = vld [vmem:[%s2307_s3 + $0x130] sm:$0xff] }
  0xa1   :  { %v1922_v37 = vpop.permute.xlu1 %310  ;;  %v1924_v38 = vpop.permute.xlu0 %305 }
  0xa2   :  { %958 = vperm.xlu1 %1602, %v656_v35   ;;  %953 = vperm.xlu0 %1601, %v655_v36  }
  0xa5   :  { %v1932_v41 = vpop.permute.xlu1 %320  ;;  %v1934_v42 = vpop.permute.xlu0 %315 }
  0xa6   :  { %878 = vperm.xlu1 %1602, %v640_v39   ;;  %873 = vperm.xlu0 %1601, %v639_v40   ;;  %v618_v39 = vld [vmem:[%s2307_s3 + $0xa8] sm:$0xff]  ;;  %v617_v40 = vld [vmem:[%s2307_s3 + $0xa0] sm:$0xff] }
  0xa9   :  { %v1942_v45 = vpop.permute.xlu1 %330  ;;  %v1944_v46 = vpop.permute.xlu0 %325 }
  0xaa   :  { %500 = vperm.xlu1 %1602, %v206_v43   ;;  %495 = vperm.xlu0 %1601, %v205_v44  }
  0xad   :  { %v1952_v49 = vpop.permute.xlu1 %340  ;;  %v1954_v50 = vpop.permute.xlu0 %335 }
  0xae   :  { %788 = vperm.xlu1 %1602, %v622_v47   ;;  %783 = vperm.xlu0 %1601, %v621_v48   ;;  %v602_v47 = vld [vmem:[%s2307_s3 + $0x28] sm:$0xff]  ;;  %v601_v48 = vld [vmem:[%s2307_s3 + $0x20] sm:$0xff] }
  0xb1   :  { %v1962_v53 = vpop.permute.xlu1 %350  ;;  %v1964_v54 = vpop.permute.xlu0 %345 }
  0xb2   :  { %708 = vperm.xlu1 %1602, %v606_v51   ;;  %703 = vperm.xlu0 %1601, %v605_v52  }
  0xb5   :  { %v1972_v57 = vpop.permute.xlu1 %360  ;;  %v1974_v58 = vpop.permute.xlu0 %355 }
  0xb6   :  { %948 = vperm.xlu1 %1602, %v654_v55   ;;  %943 = vperm.xlu0 %1601, %v653_v56   ;;  %v650_v55 = vld [vmem:[%s2307_s3 + $0x1a8] sm:$0xff]  ;;  %v649_v56 = vld [vmem:[%s2307_s3 + $0x1a0] sm:$0xff] }
  0xb9   :  { %v1982_v61 = vpop.permute.xlu1 %370  ;;  %v1984_v62 = vpop.permute.xlu0 %365 }
  0xba   :  { %868 = vperm.xlu1 %1602, %v638_v59   ;;  %863 = vperm.xlu0 %1601, %v637_v60  }
  0xbd   :  { %v1992_v3 = vpop.permute.xlu1 %380  ;;  %v1994_v4 = vpop.permute.xlu0 %375 }
  0xbe   :  { %2318 = vst [vmem:[#allocation8_spill] sm:$0xff] %v1992_v3  ;;  %2319 = vst [vmem:[#allocation9_spill] sm:$0xff] %v1994_v4  ;;  %490 = vperm.xlu1 %1602, %v204_v63   ;;  %485 = vperm.xlu0 %1601, %v203_v0   ;;  %v634_v63 = vld [vmem:[%s2307_s3 + $0x128] sm:$0xff]  ;;  %v633_v0 = vld [vmem:[%s2307_s3 + $0x120] sm:$0xff] }
  0xbf   :  { %v632_v4 = vld [vmem:[%s2307_s3 + $0x118] sm:$0xff]  ;;  %v631_v3 = vld [vmem:[%s2307_s3 + $0x110] sm:$0xff] }
  0xc1   :  { %v2002_v11 = vpop.permute.xlu1 %390  ;;  %v2004_v12 = vpop.permute.xlu0 %385 }
  0xc2   :  { %2320 = vst [vmem:[#allocation10_spill] sm:$0xff] %v2002_v11  ;;  %2321 = vst [vmem:[#allocation11_spill] sm:$0xff] %v2004_v12  ;;  %778 = vperm.xlu1 %1602, %v620_v7   ;;  %773 = vperm.xlu0 %1601, %v619_v8   ;;  %v598_v11 = vld [vmem:[%s2307_s3 + $0x8] sm:$0xff] }
  0xc5   :  { %v2012_v19 = vpop.permute.xlu1 %400  ;;  %v2014_v20 = vpop.permute.xlu0 %395 }
  0xc6   :  { %698 = vperm.xlu1 %1602, %v604_v15   ;;  %693 = vperm.xlu0 %1601, %v603_v16   ;;  %v616_v15 = vld [vmem:[%s2307_s3 + $0x98] sm:$0xff]  ;;  %v615_v16 = vld [vmem:[%s2307_s3 + $0x90] sm:$0xff] }
  0xc9   :  { %v2022_v27 = vpop.permute.xlu1 %410  ;;  %v2024_v28 = vpop.permute.xlu0 %405 }
  0xca   :  { %938 = vperm.xlu1 %1602, %v652_v23   ;;  %933 = vperm.xlu0 %1601, %v651_v24  }
  0xcd   :  { %v2032_v35 = vpop.permute.xlu1 %420  ;;  %v2034_v36 = vpop.permute.xlu0 %415 }
  0xce   :  { %858 = vperm.xlu1 %1602, %v636_v31   ;;  %853 = vperm.xlu0 %1601, %v635_v32   ;;  %v600_v31 = vld [vmem:[%s2307_s3 + $0x18] sm:$0xff]  ;;  %v599_v32 = vld [vmem:[%s2307_s3 + $0x10] sm:$0xff] }
  0xd1   :  { %v2042_v43 = vpop.permute.xlu1 %430  ;;  %v2044_v44 = vpop.permute.xlu0 %425 }
  0xd2   :  { %768 = vperm.xlu1 %1602, %v618_v39   ;;  %763 = vperm.xlu0 %1601, %v617_v40   ;;  %v1539_v39 = vld [vmem:[%s2308_s1 + $0x78] sm:$0xff]  }
  0xd5   :  { %v2052_v51 = vpop.permute.xlu1 %440  ;;  %v2054_v52 = vpop.permute.xlu0 %435 }
  0xd6   :  { %688 = vperm.xlu1 %1602, %v602_v47   ;;  %683 = vperm.xlu0 %1601, %v601_v48   ;;  %v648_v48 = vld [vmem:[%s2307_s3 + $0x198] sm:$0xff] }
  0xd9   :  { %v2062_v59 = vpop.permute.xlu1 %450  ;;  %v2064_v60 = vpop.permute.xlu0 %445 }
  0xda   :  { %928 = vperm.xlu1 %1602, %v650_v55   ;;  %923 = vperm.xlu0 %1601, %v649_v56   ;;  %v647_v55 = vld [vmem:[%s2307_s3 + $0x190] sm:$0xff]  ;;  %v1531_v56 = vld [vmem:[%s2308_s1 + $0x38] sm:$0xff]  }
  0xdd   :  { %v2072_v7 = vpop.permute.xlu1 %460  ;;  %v2074_v8 = vpop.permute.xlu0 %455 }
  0xde   :  { %2322 = vst [vmem:[#allocation12_spill] sm:$0xff] %v2072_v7  ;;  %2323 = vst [vmem:[#allocation13_spill] sm:$0xff] %v2074_v8  ;;  %848 = vperm.xlu1 %1602, %v634_v63   ;;  %843 = vperm.xlu0 %1601, %v633_v0   ;;  %v1460_v63 = vunpack.c.h.bf16 %v1539_v39  ;;  %v1459_v0 = vunpack.c.l.bf16 %v1539_v39  ;;  %v1555_v39 = vld [vmem:[%s2308_s1 + $0xf8] sm:$0xff]  }
  0xe0   :  { %v564_v8 = vmul.f32 %v1460_v63, %v1982_v61  ;;  %v563_v7 = vmul.f32 %v1459_v0, %v1984_v62  ;;  %v1547_v61 = vld [vmem:[%s2308_s1 + $0xb8] sm:$0xff]   ;;  %v1524_v63 = vunpack.c.h.bf16 %v1555_v39  ;;  %v1523_v62 = vunpack.c.l.bf16 %v1555_v39  ;;  %v614_v0 = vld [vmem:[%s2307_s3 + $0x88] sm:$0xff] }
  0xe1   :  { %v2082_v23 = vpop.permute.xlu1 %470  ;;  %v2084_v24 = vpop.permute.xlu0 %465 }
  0xe2   :  { %2324 = vst [vmem:[#allocation14_spill] sm:$0xff] %v2082_v23  ;;  %2325 = vst [vmem:[#allocation15_spill] sm:$0xff] %v2084_v24  ;;  %758 = vperm.xlu1 %1602, %v616_v15   ;;  %753 = vperm.xlu0 %1601, %v615_v16  }
  0xe5   :  { %v2095_v40 = vpop.permute.xlu1 %480  ;;  %v2097_v47 = vpop.permute.xlu0 %475 }
  0xe6   :  { %678 = vperm.xlu1 %1602, %v600_v31   ;;  %673 = vperm.xlu0 %1601, %v599_v32   ;;  %v1428_v31 = vunpack.c.h.bf16 %v1531_v56  ;;  %v1427_v32 = vunpack.c.l.bf16 %v1531_v56 }
  0xe8   :  { %v548_v6 = vmul.f32 %v1428_v31, %v1902_v29  ;;  %v547_v34 = vmul.f32 %v1427_v32, %v1904_v30 }
  0xe9   :  { %v531_v15 = vpop.permute.xlu1 %530  ;;  %v526_v16 = vpop.permute.xlu0 %525 }
  0xea   :  { %918 = vperm.xlu1 %1602, %v648_v48   ;;  %913 = vperm.xlu0 %1601, %v647_v55   ;;  %v595_v33 = vmul.f32 %v1523_v62, %v526_v16  ;;  %v646_v62 = vld [vmem:[%s2307_s3 + $0x188] sm:$0xff] }
  0xed   :  { %v819_v48 = vpop.permute.xlu1 %818  ;;  %v814_v55 = vpop.permute.xlu0 %813 }
  0xee   :  { %v1012_v2 = vadd.f32 %v819_v48, %v564_v8  ;;  %v1011_v56 = vadd.f32 %v814_v55, %v563_v7  ;;  %838 = vperm.xlu1 %1602, %v632_v4   ;;  %833 = vperm.xlu0 %1601, %v631_v3   ;;  %v613_v7 = vld [vmem:[%s2307_s3 + $0x80] sm:$0xff]  ;;  %v1492_v8 = vunpack.c.h.bf16 %v1547_v61  ;;  %v1491_v48 = vunpack.c.l.bf16 %v1547_v61 }
  0xef   :  { %v596_v55 = vmul.f32 %v1524_v63, %v531_v15  ;;  %v1538_v15 = vld [vmem:[%s2308_s1 + $0x70] sm:$0xff]  }
  0xf0   :  { %v1140_v4 = vmul.f32 0.2, %v1012_v2  ;;  %v1139_v3 = vmul.f32 0.2, %v1011_v56  ;;  %vm1075_vm0 = vcmp.gt.f32.partialorder %v1011_v56, 0.0  ;;  %vm1076_vm1 = vcmp.gt.f32.partialorder %v1012_v2, 0.0 }
  0xf1   :  { %v739_v29 = vpop.permute.xlu1 %738  ;;  %v734_v30 = vpop.permute.xlu0 %733  ;;  %v580_v16 = vmul.f32 %v1492_v8, %v2062_v59  ;;  %v630_v8 = vld [vmem:[%s2307_s3 + $0x108] sm:$0xff] }
  0xf2   :  { %v996_v31 = vadd.f32 %v739_v29, %v548_v6  ;;  %v995_v32 = vadd.f32 %v734_v30, %v547_v34  ;;  %748 = vperm.xlu1 %1602, %v614_v0   ;;  %743 = vperm.xlu0 %1601, %v613_v7   ;;  %v1203_v39 = vsel %vm1075_vm0, %v1011_v56, %v1139_v3  ;;  %v1456_v3 = vunpack.c.h.bf16 %v1538_v15 }
  0xf3   :  { %v1204_v12 = vsel %vm1076_vm1, %v1012_v2, %v1140_v4  ;;  %v1605_v4 = vld [vmem:[%s2309_s0 + $0x4] ss:$16 sps:$4 sm:$0xff]   ;;  %v1455_v29 = vunpack.c.l.bf16 %v1538_v15  ;;  %v1274_v15 = vld [vmem:[%s2310_s4 + $0x8] sm:$0xff] }
  0xf4   :  { %v1124_v24 = vmul.f32 0.2, %v996_v31  ;;  %v1123_v23 = vmul.f32 0.2, %v995_v32  ;;  %v1256_v5 = vpack.c.bf16 %v1204_v12, %v1203_v39  ;;  %vm1059_vm2 = vcmp.gt.f32.partialorder %v995_v32, 0.0  ;;  %1337 = vmatprep.mubr.bf16.mxu0 %v1605_v4 }
  0xf5   :  { %v979_v6 = vpop.permute.xlu1 %978  ;;  %v974_v34 = vpop.permute.xlu0 %973  ;;  %vm1060_vm3 = vcmp.gt.f32.partialorder %v996_v31, 0.0  ;;  %v579_v12 = vmul.f32 %v1491_v48, %v2064_v60  ;;  %v629_v48 = vld [vmem:[%s2307_s3 + $0x100] sm:$0xff] }
  0xf6   :  { %v1044_v56 = vadd.f32 %v979_v6, %v596_v55  ;;  %v1043_v61 = vadd.f32 %v974_v34, %v595_v33  ;;  %1556 = vmatprep.subr.bf16.mxu0 %v1256_v5  ;;  %668 = vperm.xlu1 %1602, %v598_v11   ;;  %v1187_v2 = vsel %vm1059_vm2, %v995_v32, %v1123_v23  ;;  %v645_v5 = vld [vmem:[%s2307_s3 + $0x180] sm:$0xff] }
  0xf7   :  { %663 = vperm.xlu0 %1601, %v597_v1   ;;  %v1188_v63 = vsel %vm1060_vm3, %v996_v31, %v1124_v24  ;;  %v1530_v1 = vld [vmem:[%s2308_s1 + $0x30] sm:$0xff]  }
  0xf8   :  { %v1172_v0 = vmul.f32 0.2, %v1044_v56  ;;  %v1171_v7 = vmul.f32 0.2, %v1043_v61  ;;  %v1248_v33 = vpack.c.bf16 %v1188_v63, %v1187_v2  ;;  %vm1107_vm4 = vcmp.gt.f32.partialorder %v1043_v61, 0.0  ;;  %v1554_v63 = vld [vmem:[%s2308_s1 + $0xf0] sm:$0xff]  }
  0xf9   :  { %v899_v11 = vpop.permute.xlu1 %898  ;;  %v894_v23 = vpop.permute.xlu0 %893  ;;  %vm1108_vm5 = vcmp.gt.f32.partialorder %v1044_v56, 0.0 }
  0xfa   :  { %v1028_v59 = vadd.f32 %v899_v11, %v580_v16  ;;  %v1027_v60 = vadd.f32 %v894_v23, %v579_v12  ;;  %1557 = vmatpush3.bf16.msra.mxu0 %v1248_v33  ;;  %908 = vperm.xlu1 %1602, %v646_v62   ;;  %v1235_v24 = vsel %vm1107_vm4, %v1043_v61, %v1171_v7  ;;  %v1423_v61 = vunpack.c.l.bf16 %v1530_v1 }
  0xfb   :  { %903 = vperm.xlu0 %1601, %v645_v5   ;;  %v1236_v30 = vsel %vm1108_vm5, %v1044_v56, %v1172_v0  ;;  %v1424_v56 = vunpack.c.h.bf16 %v1530_v1  ;;  %v562_v16 = vmul.f32 %v1456_v3, %v1972_v57  ;;  %v561_v12 = vmul.f32 %v1455_v29, %v1974_v58  ;;  %v1273_v0 = vld [vmem:[%s2310_s4] sm:$0xff]  ;;  %v1546_v5 = vld [vmem:[%s2308_s1 + $0xb0] sm:$0xff]   ;;  %v1608_v57 = vld [vmem:[%s2309_s0 + $0xc] ss:$16 sps:$4 sm:$0xff]  }
  0xfc   :  { %v1156_v31 = vmul.f32 0.2, %v1028_v59  ;;  %v1155_v32 = vmul.f32 0.2, %v1027_v60  ;;  %v1272_v39 = vpack.c.bf16 %v1236_v30, %v1235_v24  ;;  %vm1091_vm6 = vcmp.gt.f32.partialorder %v1027_v60, 0.0  ;;  %1378 = vmatprep.mubr.bf16.mxu1 %v1608_v57 }
  0xfd   :  { %v521_v55 = vpop.permute.xlu1 %520  ;;  %v516_v6 = vpop.permute.xlu0 %515  ;;  %vm1092_vm7 = vcmp.gt.f32.partialorder %v1028_v59, 0.0  ;;  %v546_v58 = vmul.f32 %v1424_v56, %v1892_v25  ;;  %v545_v1 = vmul.f32 %v1423_v61, %v1894_v26  ;;  %v1488_v3 = vunpack.c.h.bf16 %v1546_v5 }
  0xfe   :  { %1578 = vmatprep.subr.bf16.mxu1 %v1272_v39  ;;  %828 = vperm.xlu1 %1602, %v630_v8   ;;  %v1219_v34 = vsel %vm1091_vm6, %v1027_v60, %v1155_v32  ;;  %v1220_v2 = vsel %vm1092_vm7, %v1028_v59, %v1156_v31  ;;  %v1520_v59 = vunpack.c.h.bf16 %v1554_v63  ;;  %v1519_v60 = vunpack.c.l.bf16 %v1554_v63 }
  0xff   :  { %823 = vperm.xlu0 %1601, %v629_v48   ;;  %v1264_v62 = vpack.c.bf16 %v1220_v2, %v1219_v34  ;;  %v1487_v48 = vunpack.c.l.bf16 %v1546_v5 }
 0x100   :  { %v594_v34 = vmul.f32 %v1520_v59, %v521_v55  ;;  %v593_v25 = vmul.f32 %v1519_v60, %v516_v6  ;;  %v1529_v60 = vld [vmem:[%s2308_s1 + $0x28] sm:$0xff]  }
 0x101   :  { %v809_v7 = vpop.permute.xlu1 %808  ;;  %v804_v33 = vpop.permute.xlu0 %803  ;;  %1579 = vmatpush3.bf16.msra.mxu1 %v1264_v62  ;;  %v577_v55 = vmul.f32 %v1487_v48, %v2054_v52 }
 0x102   :  { %v1010_v11 = vadd.f32 %v809_v7, %v562_v16  ;;  %v1009_v23 = vadd.f32 %v804_v33, %v561_v12  ;;  %1282 = vperm.xlu1 %1602, %v1274_v15   ;;  %v578_v7 = vmul.f32 %v1488_v3, %v2052_v51 }
 0x103   :  { %1277 = vperm.xlu0 %1601, %v1273_v0   ;;  %v1537_v0 = vld [vmem:[%s2308_s1 + $0x68] sm:$0xff]  }
 0x104   :  { %vm1074_vm8 = vcmp.gt.f32.partialorder %v1010_v11, 0.0  ;;  %v1138_v24 = vmul.f32 0.2, %v1010_v11  ;;  %vm1073_vm9 = vcmp.gt.f32.partialorder %v1009_v23, 0.0  ;;  %v1137_v4 = vmul.f32 0.2, %v1009_v23 }
 0x105   :  { %v729_v29 = vpop.permute.xlu1 %728  ;;  %v724_v30 = vpop.permute.xlu0 %723  ;;  %v1451_v51 = vunpack.c.l.bf16 %v1537_v0 }
 0x106   :  { %v994_v8 = vadd.f32 %v729_v29, %v546_v58  ;;  %v993_v31 = vadd.f32 %v724_v30, %v545_v1  ;;  %v1201_v32 = vsel %vm1073_vm9, %v1009_v23, %v1137_v4  ;;  %v1202_v39 = vsel %vm1074_vm8, %v1010_v11, %v1138_v24 }
 0x107   :  { %v1255_v56 = vpack.c.bf16 %v1202_v39, %v1201_v32  ;;  %v1452_v24 = vunpack.c.h.bf16 %v1537_v0  ;;  %v1420_v32 = vunpack.c.h.bf16 %v1529_v60  ;;  %v1419_v39 = vunpack.c.l.bf16 %v1529_v60 }
 0x108   :  { %vm1058_vm10 = vcmp.gt.f32.partialorder %v994_v8, 0.0  ;;  %v1122_v26 = vmul.f32 0.2, %v994_v8  ;;  %vm1057_vm11 = vcmp.gt.f32.partialorder %v993_v31, 0.0  ;;  %v1121_v61 = vmul.f32 0.2, %v993_v31 }
 0x109   :  { %v969_v2 = vpop.permute.xlu1 %968  ;;  %v964_v15 = vpop.permute.xlu0 %963  ;;  %1558 = vmatprep.subr.bf16.mxu0 %v1255_v56  ;;  %v1553_v56 = vld [vmem:[%s2308_s1 + $0xe8] sm:$0xff]  }
 0x10a   :  { %v1042_v16 = vadd.f32 %v969_v2, %v594_v34  ;;  %v1041_v12 = vadd.f32 %v964_v15, %v593_v25  ;;  %v1185_v63 = vsel %vm1057_vm11, %v993_v31, %v1121_v61  ;;  %v1186_v62 = vsel %vm1058_vm10, %v994_v8, %v1122_v26  ;;  %v1545_v2 = vld [vmem:[%s2308_s1 + $0xa8] sm:$0xff]  }
 0x10b   :  { %v1247_v6 = vpack.c.bf16 %v1186_v62, %v1185_v63  ;;  %v560_v34 = vmul.f32 %v1452_v24, %v1962_v53  ;;  %v559_v25 = vmul.f32 %v1451_v51, %v1964_v54  ;;  %v543_v63 = vmul.f32 %v1419_v39, %v1884_v22 }
 0x10c   :  { %vm1106_vm12 = vcmp.gt.f32.partialorder %v1042_v16, 0.0  ;;  %v1170_v33 = vmul.f32 0.2, %v1042_v16  ;;  %vm1105_vm13 = vcmp.gt.f32.partialorder %v1041_v12, 0.0  ;;  %v1169_v5 = vmul.f32 0.2, %v1041_v12 }
 0x10d   :  { %v889_v11 = vpop.permute.xlu1 %888  ;;  %v884_v23 = vpop.permute.xlu0 %883  ;;  %1559 = vmatpush3.bf16.msra.mxu0 %v1247_v6  ;;  %v1516_v53 = vunpack.c.h.bf16 %v1553_v56  ;;  %v1515_v62 = vunpack.c.l.bf16 %v1553_v56 }
 0x10e   :  { %v1026_v57 = vadd.f32 %v889_v11, %v578_v7  ;;  %v1025_v58 = vadd.f32 %v884_v23, %v577_v55  ;;  %v1233_v1 = vsel %vm1105_vm13, %v1041_v12, %v1169_v5  ;;  %v1234_v59 = vsel %vm1106_vm12, %v1042_v16, %v1170_v33 }
 0x10f   :  { %v1271_v4 = vpack.c.bf16 %v1234_v59, %v1233_v1  ;;  %v544_v12 = vmul.f32 %v1420_v32, %v1882_v21  ;;  %v1484_v7 = vunpack.c.h.bf16 %v1545_v2 }
 0x110   :  { %vm1090_vm14 = vcmp.gt.f32.partialorder %v1026_v57, 0.0  ;;  %v1154_v52 = vmul.f32 0.2, %v1026_v57  ;;  %vm1089_vm15 = vcmp.gt.f32.partialorder %v1025_v58, 0.0  ;;  %v1153_v3 = vmul.f32 0.2, %v1025_v58 }
 0x111   :  { %v511_v29 = vpop.permute.xlu1 %510  ;;  %v506_v30 = vpop.permute.xlu0 %505  ;;  %1580 = vmatprep.subr.bf16.mxu1 %v1271_v4 }
 0x112   :  { %v1217_v8 = vsel %vm1089_vm15, %v1025_v58, %v1153_v3  ;;  %v1218_v31 = vsel %vm1090_vm14, %v1026_v57, %v1154_v52  ;;  %v1483_v57 = vunpack.c.l.bf16 %v1545_v2  ;;  %v592_v58 = vmul.f32 %v1516_v53, %v511_v29  ;;  %v1528_v2 = vld [vmem:[%s2308_s1 + $0x20] sm:$0xff]  }
 0x113   :  { %v1263_v48 = vpack.c.bf16 %v1218_v31, %v1217_v8  ;;  %v591_v1 = vmul.f32 %v1515_v62, %v506_v30  ;;  %v1536_v8 = vld [vmem:[%s2308_s1 + $0x60] sm:$0xff]   ;;  %v576_v31 = vmul.f32 %v1484_v7, %v2042_v43  ;;  %v1415_v7 = vunpack.c.l.bf16 %v1528_v2 }
 0x114   :  { %v575_v29 = vmul.f32 %v1483_v57, %v2044_v44  ;;  %v1447_v43 = vunpack.c.l.bf16 %v1536_v8  ;;  %v1544_v57 = vld [vmem:[%s2308_s1 + $0xa0] sm:$0xff]  }
 0x115   :  { %v799_v26 = vpop.permute.xlu1 %798  ;;  %v794_v61 = vpop.permute.xlu0 %793  ;;  %1581 = vmatpush3.bf16.msra.mxu1 %v1263_v48 }
 0x116   :  { %v1008_v15 = vadd.f32 %v799_v26, %v560_v34  ;;  %v1007_v16 = vadd.f32 %v794_v61, %v559_v25 }
 0x118   :  { %vm1072_vm0 = vcmp.gt.f32.partialorder %v1008_v15, 0.0  ;;  %v1136_v54 = vmul.f32 0.2, %v1008_v15  ;;  %vm1071_vm1 = vcmp.gt.f32.partialorder %v1007_v16, 0.0  ;;  %v1135_v0 = vmul.f32 0.2, %v1007_v16 }
 0x119   :  { %v719_v55 = vpop.permute.xlu1 %718  ;;  %v714_v6 = vpop.permute.xlu0 %713 }
 0x11a   :  { %v992_v33 = vadd.f32 %v719_v55, %v544_v12  ;;  %v991_v5 = vadd.f32 %v714_v6, %v543_v63  ;;  %v1199_v11 = vsel %vm1071_vm1, %v1007_v16, %v1135_v0  ;;  %v1200_v23 = vsel %vm1072_vm0, %v1008_v15, %v1136_v54 }
 0x11b   :  { %v1254_v59 = vpack.c.bf16 %v1200_v23, %v1199_v11  ;;  %v1448_v15 = vunpack.c.h.bf16 %v1536_v8  ;;  %v1416_v0 = vunpack.c.h.bf16 %v1528_v2  ;;  %v1535_v2 = vld [vmem:[%s2308_s1 + $0x58] sm:$0xff]  }
 0x11c   :  { %vm1056_vm2 = vcmp.gt.f32.partialorder %v992_v33, 0.0  ;;  %v1120_v21 = vmul.f32 0.2, %v992_v33  ;;  %vm1055_vm3 = vcmp.gt.f32.partialorder %v991_v5, 0.0  ;;  %v1119_v22 = vmul.f32 0.2, %v991_v5 }
 0x11d   :  { %v959_v60 = vpop.permute.xlu1 %958  ;;  %v954_v24 = vpop.permute.xlu0 %953  ;;  %1560 = vmatprep.subr.bf16.mxu0 %v1254_v59  ;;  %v558_v6 = vmul.f32 %v1448_v15, %v1952_v49  ;;  %v542_v59 = vmul.f32 %v1416_v0, %v1872_v17 }
 0x11e   :  { %v1040_v51 = vadd.f32 %v959_v60, %v592_v58  ;;  %v1039_v4 = vadd.f32 %v954_v24, %v591_v1  ;;  %v1183_v52 = vsel %vm1055_vm3, %v991_v5, %v1119_v22  ;;  %v1184_v3 = vsel %vm1056_vm2, %v992_v33, %v1120_v21  ;;  %v1552_v5 = vld [vmem:[%s2308_s1 + $0xe0] sm:$0xff]  }
 0x11f   :  { %v1246_v30 = vpack.c.bf16 %v1184_v3, %v1183_v52  ;;  %v557_v33 = vmul.f32 %v1447_v43, %v1954_v50  ;;  %v541_v21 = vmul.f32 %v1415_v7, %v1874_v18  ;;  %v1512_v49 = vunpack.c.h.bf16 %v1552_v5 }
 0x120   :  { %vm1104_vm4 = vcmp.gt.f32.partialorder %v1040_v51, 0.0  ;;  %v1168_v32 = vmul.f32 0.2, %v1040_v51  ;;  %vm1103_vm5 = vcmp.gt.f32.partialorder %v1039_v4, 0.0  ;;  %v1167_v39 = vmul.f32 0.2, %v1039_v4 }
 0x121   :  { %v879_v48 = vpop.permute.xlu1 %878  ;;  %v874_v34 = vpop.permute.xlu0 %873  ;;  %1561 = vmatpush3.bf16.msra.mxu0 %v1246_v30  ;;  %v1511_v22 = vunpack.c.l.bf16 %v1552_v5  ;;  %v1480_v24 = vunpack.c.h.bf16 %v1544_v57 }
 0x122   :  { %v1024_v25 = vadd.f32 %v879_v48, %v576_v31  ;;  %v1023_v56 = vadd.f32 %v874_v34, %v575_v29  ;;  %v1231_v26 = vsel %vm1103_vm5, %v1039_v4, %v1167_v39  ;;  %v1232_v61 = vsel %vm1104_vm4, %v1040_v51, %v1168_v32 }
 0x123   :  { %v1270_v16 = vpack.c.bf16 %v1232_v61, %v1231_v26  ;;  %v1479_v29 = vunpack.c.l.bf16 %v1544_v57  ;;  %v574_v15 = vmul.f32 %v1480_v24, %v2032_v35  ;;  %v1443_v35 = vunpack.c.l.bf16 %v1535_v2 }
 0x124   :  { %vm1088_vm6 = vcmp.gt.f32.partialorder %v1024_v25, 0.0  ;;  %v1152_v44 = vmul.f32 0.2, %v1024_v25  ;;  %vm1087_vm7 = vcmp.gt.f32.partialorder %v1023_v56, 0.0  ;;  %v1151_v12 = vmul.f32 0.2, %v1023_v56 }
 0x125   :  { %v501_v63 = vpop.permute.xlu1 %500  ;;  %v496_v53 = vpop.permute.xlu0 %495  ;;  %1582 = vmatprep.subr.bf16.mxu1 %v1270_v16  ;;  %v573_v43 = vmul.f32 %v1479_v29, %v2034_v36 }
 0x126   :  { %v1215_v62 = vsel %vm1087_vm7, %v1023_v56, %v1151_v12  ;;  %v1216_v54 = vsel %vm1088_vm6, %v1024_v25, %v1152_v44  ;;  %v590_v30 = vmul.f32 %v1512_v49, %v501_v63  ;;  %v589_v32 = vmul.f32 %v1511_v22, %v496_v53 }
 0x127   :  { %v1262_v55 = vpack.c.bf16 %v1216_v54, %v1215_v62  ;;  %v555_v22 = vmul.f32 %v1443_v35, %v1944_v46 }
 0x129   :  { %v789_v11 = vpop.permute.xlu1 %788  ;;  %v784_v23 = vpop.permute.xlu0 %783  ;;  %1583 = vmatpush3.bf16.msra.mxu1 %v1262_v55  ;;  %v1527_v55 = vld [vmem:[%s2308_s1 + $0x18] sm:$0xff]  }
 0x12a   :  { %v1006_v58 = vadd.f32 %v789_v11, %v558_v6  ;;  %v1005_v1 = vadd.f32 %v784_v23, %v557_v33  ;;  %v1444_v6 = vunpack.c.h.bf16 %v1535_v2 }
 0x12c   :  { %vm1070_vm8 = vcmp.gt.f32.partialorder %v1006_v58, 0.0  ;;  %v1134_v50 = vmul.f32 0.2, %v1006_v58  ;;  %vm1069_vm9 = vcmp.gt.f32.partialorder %v1005_v1, 0.0  ;;  %v1133_v60 = vmul.f32 0.2, %v1005_v1 }
 0x12d   :  { %v709_v51 = vpop.permute.xlu1 %708  ;;  %v704_v4 = vpop.permute.xlu0 %703  ;;  %v556_v49 = vmul.f32 %v1444_v6, %v1942_v45 }
 0x12e   :  { %v990_v52 = vadd.f32 %v709_v51, %v542_v59  ;;  %v989_v3 = vadd.f32 %v704_v4, %v541_v21  ;;  %v1197_v8 = vsel %vm1069_vm9, %v1005_v1, %v1133_v60  ;;  %v1198_v31 = vsel %vm1070_vm8, %v1006_v58, %v1134_v50  ;;  %v1551_v50 = vld [vmem:[%s2308_s1 + $0xd8] sm:$0xff]  }
 0x12f   :  { %v1253_v39 = vpack.c.bf16 %v1198_v31, %v1197_v8  ;;  %v1412_v1 = vunpack.c.h.bf16 %v1527_v55  ;;  %v1411_v59 = vunpack.c.l.bf16 %v1527_v55  ;;  %v1543_v51 = vld [vmem:[%s2308_s1 + $0x98] sm:$0xff]   ;;  %v1508_v45 = vunpack.c.h.bf16 %v1551_v50 }
 0x130   :  { %vm1054_vm10 = vcmp.gt.f32.partialorder %v990_v52, 0.0  ;;  %v1118_v17 = vmul.f32 0.2, %v990_v52  ;;  %vm1053_vm11 = vcmp.gt.f32.partialorder %v989_v3, 0.0  ;;  %v1117_v18 = vmul.f32 0.2, %v989_v3 }
 0x131   :  { %v949_v48 = vpop.permute.xlu1 %948  ;;  %v944_v34 = vpop.permute.xlu0 %943  ;;  %1562 = vmatprep.subr.bf16.mxu0 %v1253_v39  ;;  %v539_v8 = vmul.f32 %v1411_v59, %v1864_v14  ;;  %v1507_v31 = vunpack.c.l.bf16 %v1551_v50 }
 0x132   :  { %v1038_v25 = vadd.f32 %v949_v48, %v590_v30  ;;  %v1037_v56 = vadd.f32 %v944_v34, %v589_v32  ;;  %v1181_v26 = vsel %vm1053_vm11, %v989_v3, %v1117_v18  ;;  %v1182_v61 = vsel %vm1054_vm10, %v990_v52, %v1118_v17  ;;  %v1534_v17 = vld [vmem:[%s2308_s1 + $0x50] sm:$0xff]  }
 0x133   :  { %v1245_v16 = vpack.c.bf16 %v1182_v61, %v1181_v26  ;;  %v540_v3 = vmul.f32 %v1412_v1, %v1862_v13  ;;  %v1476_v30 = vunpack.c.h.bf16 %v1543_v51  ;;  %v1475_v13 = vunpack.c.l.bf16 %v1543_v51  ;;  %v1542_v51 = vld [vmem:[%s2308_s1 + $0x90] sm:$0xff]  }
 0x134   :  { %vm1102_vm12 = vcmp.gt.f32.partialorder %v1038_v25, 0.0  ;;  %v1166_v44 = vmul.f32 0.2, %v1038_v25  ;;  %vm1101_vm13 = vcmp.gt.f32.partialorder %v1037_v56, 0.0  ;;  %v1165_v12 = vmul.f32 0.2, %v1037_v56 }
 0x135   :  { %v869_v63 = vpop.permute.xlu1 %868  ;;  %v864_v53 = vpop.permute.xlu0 %863  ;;  %1563 = vmatpush3.bf16.msra.mxu0 %v1245_v16 }
 0x136   :  { %v1022_v62 = vadd.f32 %v869_v63, %v574_v15  ;;  %v1021_v54 = vadd.f32 %v864_v53, %v573_v43  ;;  %v1229_v0 = vsel %vm1101_vm13, %v1037_v56, %v1165_v12  ;;  %v1230_v7 = vsel %vm1102_vm12, %v1038_v25, %v1166_v44  ;;  %v1526_v44 = vld [vmem:[%s2308_s1 + $0x10] sm:$0xff]  }
 0x137   :  { %v1269_v33 = vpack.c.bf16 %v1230_v7, %v1229_v0  ;;  %v1440_v15 = vunpack.c.h.bf16 %v1534_v17  ;;  %v572_v0 = vmul.f32 %v1476_v30, %v2022_v27  ;;  %v571_v7 = vmul.f32 %v1475_v13, %v2024_v28 }
 0x138   :  { %vm1086_vm14 = vcmp.gt.f32.partialorder %v1022_v62, 0.0  ;;  %v1150_v36 = vmul.f32 0.2, %v1022_v62  ;;  %vm1085_vm15 = vcmp.gt.f32.partialorder %v1021_v54, 0.0  ;;  %v1149_v5 = vmul.f32 0.2, %v1021_v54 }
 0x139   :  { %v491_v11 = vpop.permute.xlu1 %490  ;;  %v486_v23 = vpop.permute.xlu0 %485  ;;  %1584 = vmatprep.subr.bf16.mxu1 %v1269_v33  ;;  %v1408_v33 = vunpack.c.h.bf16 %v1526_v44  ;;  %v1407_v27 = vunpack.c.l.bf16 %v1526_v44  ;;  %v554_v28 = vmul.f32 %v1440_v15, %v1932_v41  ;;  %v1472_v30 = vunpack.c.h.bf16 %v1542_v51 }
 0x13a   :  { %v1213_v57 = vsel %vm1085_vm15, %v1021_v54, %v1149_v5  ;;  %v1214_v58 = vsel %vm1086_vm14, %v1022_v62, %v1150_v36  ;;  %v588_v56 = vmul.f32 %v1508_v45, %v491_v11  ;;  %v587_v14 = vmul.f32 %v1507_v31, %v486_v23  ;;  %v1550_v11 = vld [vmem:[%s2308_s1 + $0xd0] sm:$0xff]  }
 0x13b   :  { %v1261_v21 = vpack.c.bf16 %v1214_v58, %v1213_v57  ;;  %v1439_v54 = vunpack.c.l.bf16 %v1534_v17  ;;  %v1504_v50 = vunpack.c.h.bf16 %v1550_v11  ;;  %v538_v41 = vmul.f32 %v1408_v33, %v1852_v9  ;;  %v1533_v17 = vld [vmem:[%s2308_s1 + $0x48] sm:$0xff]  }
 0x13c   :  { %v1503_v45 = vunpack.c.l.bf16 %v1550_v11 }
 0x13d   :  { %v779_v60 = vpop.permute.xlu1 %778  ;;  %v774_v24 = vpop.permute.xlu0 %773  ;;  %1585 = vmatpush3.bf16.msra.mxu1 %v1261_v21  ;;  %v553_v59 = vmul.f32 %v1439_v54, %v1934_v42  ;;  %v537_v42 = vmul.f32 %v1407_v27, %v1854_v10  ;;  %v586_v10 = vmul.f32 %v1504_v50, %v2095_v40  ;;  %v1435_v40 = vunpack.c.l.bf16 %v1533_v17 }
 0x13e   :  { %v1004_v4 = vadd.f32 %v779_v60, %v556_v49  ;;  %v1003_v52 = vadd.f32 %v774_v24, %v555_v22  ;;  %v585_v13 = vmul.f32 %v1503_v45, %v2097_v47  ;;  %v570_v47 = vmul.f32 %v1472_v30, %v2012_v19 }
 0x140   :  { %vm1068_vm0 = vcmp.gt.f32.partialorder %v1004_v4, 0.0  ;;  %v1132_v46 = vmul.f32 0.2, %v1004_v4  ;;  %vm1067_vm1 = vcmp.gt.f32.partialorder %v1003_v52, 0.0  ;;  %v1131_v29 = vmul.f32 0.2, %v1003_v52 }
 0x141   :  { %v699_v32 = vpop.permute.xlu1 %698  ;;  %v694_v39 = vpop.permute.xlu0 %693 }
 0x142   :  { %v988_v18 = vadd.f32 %v699_v32, %v540_v3  ;;  %v987_v48 = vadd.f32 %v694_v39, %v539_v8  ;;  %v1195_v34 = vsel %vm1067_vm1, %v1003_v52, %v1131_v29  ;;  %v1196_v25 = vsel %vm1068_vm0, %v1004_v4, %v1132_v46 }
 0x143   :  { %v1252_v26 = vpack.c.bf16 %v1196_v25, %v1195_v34  ;;  %v1471_v25 = vunpack.c.l.bf16 %v1542_v51 }
 0x144   :  { %vm1052_vm2 = vcmp.gt.f32.partialorder %v988_v18, 0.0  ;;  %v1116_v61 = vmul.f32 0.2, %v988_v18  ;;  %vm1051_vm3 = vcmp.gt.f32.partialorder %v987_v48, 0.0  ;;  %v1115_v2 = vmul.f32 0.2, %v987_v48 }
 0x145   :  { %v939_v43 = vpop.permute.xlu1 %938  ;;  %v934_v16 = vpop.permute.xlu0 %933  ;;  %1564 = vmatprep.subr.bf16.mxu0 %v1252_v26 }
 0x146   :  { %v1036_v12 = vadd.f32 %v939_v43, %v588_v56  ;;  %v1035_v63 = vadd.f32 %v934_v16, %v587_v14  ;;  %v1179_v53 = vsel %vm1051_vm3, %v987_v48, %v1115_v2  ;;  %v1180_v62 = vsel %vm1052_vm2, %v988_v18, %v1116_v61  ;;  %v1525_v43 = vld [vmem:[%s2308_s1 + $0x8] sm:$0xff]  }
 0x147   :  { %v1244_v55 = vpack.c.bf16 %v1180_v62, %v1179_v53  ;;  %v1436_v61 = vunpack.c.h.bf16 %v1533_v17  ;;  %v569_v53 = vmul.f32 %v1471_v25, %v2014_v20  ;;  %v1404_v19 = vunpack.c.h.bf16 %v1525_v43  ;;  %v2328_v17 = vld [vmem:[#allocation14_spill] sm:$0xff] }
 0x148   :  { %vm1100_vm4 = vcmp.gt.f32.partialorder %v1036_v12, 0.0  ;;  %v1164_v6 = vmul.f32 0.2, %v1036_v12  ;;  %vm1099_vm5 = vcmp.gt.f32.partialorder %v1035_v63, 0.0  ;;  %v1163_v35 = vmul.f32 0.2, %v1035_v63 }
 0x149   :  { %v859_v36 = vpop.permute.xlu1 %858  ;;  %v854_v5 = vpop.permute.xlu0 %853  ;;  %1565 = vmatpush3.bf16.msra.mxu0 %v1244_v55  ;;  %v552_v20 = vmul.f32 %v1436_v61, %v1922_v37  ;;  %v2326_v37 = vld [vmem:[#allocation2_spill] sm:$0xff] }
 0x14a   :  { %v1020_v23 = vadd.f32 %v859_v36, %v572_v0  ;;  %v1019_v57 = vadd.f32 %v854_v5, %v571_v7  ;;  %v1227_v58 = vsel %vm1099_vm5, %v1035_v63, %v1163_v35  ;;  %v1228_v1 = vsel %vm1100_vm4, %v1036_v12, %v1164_v6  ;;  %v1549_v35 = vld [vmem:[%s2308_s1 + $0xc8] sm:$0xff]  }
 0x14b   :  { %v1268_v21 = vpack.c.bf16 %v1228_v1, %v1227_v58  ;;  %v1403_v7 = vunpack.c.l.bf16 %v1525_v43  ;;  %v1500_v27 = vunpack.c.h.bf16 %v1549_v35 }
 0x14c   :  { %vm1084_vm6 = vcmp.gt.f32.partialorder %v1020_v23, 0.0  ;;  %v1148_v49 = vmul.f32 0.2, %v1020_v23  ;;  %vm1083_vm7 = vcmp.gt.f32.partialorder %v1019_v57, 0.0  ;;  %v1147_v22 = vmul.f32 0.2, %v1019_v57 }
 0x14d   :  { %v769_v60 = vpop.permute.xlu1 %768  ;;  %v764_v24 = vpop.permute.xlu0 %763  ;;  %1586 = vmatprep.subr.bf16.mxu1 %v1268_v21  ;;  %v1541_v21 = vld [vmem:[%s2308_s1 + $0x88] sm:$0xff]  }
 0x14e   :  { %v1002_v4 = vadd.f32 %v769_v60, %v554_v28  ;;  %v1001_v52 = vadd.f32 %v764_v24, %v553_v59  ;;  %v1211_v3 = vsel %vm1083_vm7, %v1019_v57, %v1147_v22  ;;  %v1212_v8 = vsel %vm1084_vm6, %v1020_v23, %v1148_v49 }
 0x14f   :  { %v1260_v31 = vpack.c.bf16 %v1212_v8, %v1211_v3  ;;  %v551_v23 = vmul.f32 %v1435_v40, %v1924_v38  ;;  %v535_v24 = vmul.f32 %v1403_v7, %v2326_v37  ;;  %v2327_v38 = vld [vmem:[#allocation4_spill] sm:$0xff] }
 0x150   :  { %vm1066_vm8 = vcmp.gt.f32.partialorder %v1002_v4, 0.0  ;;  %v1130_v46 = vmul.f32 0.2, %v1002_v4  ;;  %vm1065_vm9 = vcmp.gt.f32.partialorder %v1001_v52, 0.0  ;;  %v1129_v29 = vmul.f32 0.2, %v1001_v52 }
 0x151   :  { %v689_v32 = vpop.permute.xlu1 %688  ;;  %v684_v39 = vpop.permute.xlu0 %683  ;;  %1587 = vmatpush3.bf16.msra.mxu1 %v1260_v31  ;;  %v536_v51 = vmul.f32 %v1404_v19, %v2327_v38  ;;  %v1532_v31 = vld [vmem:[%s2308_s1 + $0x40] sm:$0xff]  }
 0x152   :  { %v986_v18 = vadd.f32 %v689_v32, %v538_v41  ;;  %v985_v48 = vadd.f32 %v684_v39, %v537_v42  ;;  %v1193_v34 = vsel %vm1065_vm9, %v1001_v52, %v1129_v29  ;;  %v1194_v9 = vsel %vm1066_vm8, %v1002_v4, %v1130_v46 }
 0x153   :  { %v1251_v56 = vpack.c.bf16 %v1194_v9, %v1193_v34  ;;  %v1499_v4 = vunpack.c.l.bf16 %v1549_v35  ;;  %v1468_v41 = vunpack.c.h.bf16 %v1541_v21  ;;  %v1467_v39 = vunpack.c.l.bf16 %v1541_v21 }
 0x154   :  { %vm1050_vm10 = vcmp.gt.f32.partialorder %v986_v18, 0.0  ;;  %v1114_v14 = vmul.f32 0.2, %v986_v18  ;;  %vm1049_vm11 = vcmp.gt.f32.partialorder %v985_v48, 0.0  ;;  %v1113_v26 = vmul.f32 0.2, %v985_v48 }
 0x155   :  { %v929_v2 = vpop.permute.xlu1 %928  ;;  %v924_v15 = vpop.permute.xlu0 %923  ;;  %1566 = vmatprep.subr.bf16.mxu0 %v1251_v56  ;;  %v1431_v43 = vunpack.c.l.bf16 %v1532_v31 }
 0x156   :  { %v1034_v16 = vadd.f32 %v929_v2, %v586_v10  ;;  %v1033_v44 = vadd.f32 %v924_v15, %v585_v13  ;;  %v1177_v12 = vsel %vm1049_vm11, %v985_v48, %v1113_v26  ;;  %v1178_v63 = vsel %vm1050_vm10, %v986_v18, %v1114_v14  ;;  %v2329_v48 = vld [vmem:[#allocation15_spill] sm:$0xff] }
 0x157   :  { %v1243_v62 = vpack.c.bf16 %v1178_v63, %v1177_v12  ;;  %v584_v18 = vmul.f32 %v1500_v27, %v2328_v17  ;;  %v583_v34 = vmul.f32 %v1499_v4, %v2329_v48  ;;  %v1432_v13 = vunpack.c.h.bf16 %v1532_v31  ;;  %v2331_v12 = vld [vmem:[#allocation11_spill] sm:$0xff] }
 0x158   :  { %vm1098_vm12 = vcmp.gt.f32.partialorder %v1034_v16, 0.0  ;;  %v1162_v54 = vmul.f32 0.2, %v1034_v16  ;;  %vm1097_vm13 = vcmp.gt.f32.partialorder %v1033_v44, 0.0  ;;  %v1161_v0 = vmul.f32 0.2, %v1033_v44 }
 0x159   :  { %v849_v55 = vpop.permute.xlu1 %848  ;;  %v844_v6 = vpop.permute.xlu0 %843  ;;  %1567 = vmatpush3.bf16.msra.mxu0 %v1243_v62  ;;  %v567_v63 = vmul.f32 %v1467_v39, %v2331_v12  ;;  %v2335_v4 = vld [vmem:[#allocation3_spill] sm:$0xff]  ;;  %v2336_v39 = vld [vmem:[#allocation12_spill] sm:$0xff] }
 0x15a   :  { %v1018_v33 = vadd.f32 %v849_v55, %v570_v47  ;;  %v1017_v36 = vadd.f32 %v844_v6, %v569_v53  ;;  %v1225_v5 = vsel %vm1097_vm13, %v1033_v44, %v1161_v0  ;;  %v1226_v11 = vsel %vm1098_vm12, %v1034_v16, %v1162_v54  ;;  %v2330_v16 = vld [vmem:[#allocation10_spill] sm:$0xff] }
 0x15b   :  { %v1267_v57 = vpack.c.bf16 %v1226_v11, %v1225_v5  ;;  %v568_v44 = vmul.f32 %v1468_v41, %v2330_v16  ;;  %v1398_v0 = vld [vmem:[%s2308_s1] sm:$0xff]   ;;  %v2333_v11 = vld [vmem:[#allocation7_spill] sm:$0xff] }
 0x15c   :  { %vm1082_vm14 = vcmp.gt.f32.partialorder %v1018_v33, 0.0  ;;  %v1146_v58 = vmul.f32 0.2, %v1018_v33  ;;  %vm1081_vm15 = vcmp.gt.f32.partialorder %v1017_v36, 0.0  ;;  %v1145_v1 = vmul.f32 0.2, %v1017_v36 }
 0x15d   :  { %v759_v28 = vpop.permute.xlu1 %758  ;;  %v754_v59 = vpop.permute.xlu0 %753  ;;  %1588 = vmatprep.subr.bf16.mxu1 %v1267_v57  ;;  %v549_v19 = vmul.f32 %v1431_v43, %v2333_v11  ;;  %v1606_v11 = vld [vmem:[%s2309_s0 + $0x8] ss:$16 sps:$4 sm:$0xff]  }
 0x15e   :  { %v1000_v49 = vadd.f32 %v759_v28, %v552_v20  ;;  %v999_v22 = vadd.f32 %v754_v59, %v551_v23  ;;  %v1209_v50 = vsel %vm1081_vm15, %v1017_v36, %v1145_v1  ;;  %v1210_v60 = vsel %vm1082_vm14, %v1018_v33, %v1146_v58  ;;  %v2332_v36 = vld [vmem:[#allocation6_spill] sm:$0xff] }
 0x15f   :  { %v1259_v52 = vpack.c.bf16 %v1210_v60, %v1209_v50  ;;  %v1400_v33 = vunpack.c.h.bf16 %v1398_v0  ;;  %v550_v5 = vmul.f32 %v1432_v13, %v2332_v36  ;;  %v1548_v20 = vld [vmem:[%s2308_s1 + $0xc0] sm:$0xff]   ;;  %v1399_v1 = vunpack.c.l.bf16 %v1398_v0  ;;  %v2334_v50 = vld [vmem:[#allocation5_spill] sm:$0xff] }
 0x160   :  { %vm1064_vm0 = vcmp.gt.f32.partialorder %v1000_v49, 0.0  ;;  %v1128_v3 = vmul.f32 0.2, %v1000_v49  ;;  %vm1063_vm1 = vcmp.gt.f32.partialorder %v999_v22, 0.0  ;;  %v1127_v8 = vmul.f32 0.2, %v999_v22 }
 0x161   :  { %v679_v42 = vpop.permute.xlu1 %678  ;;  %v674_v45 = vpop.permute.xlu0 %673  ;;  %1589 = vmatpush3.bf16.msra.mxu1 %v1259_v52  ;;  %v534_v60 = vmul.f32 %v1400_v33, %v2334_v50  ;;  %v1496_v37 = vunpack.c.h.bf16 %v1548_v20  ;;  %v533_v52 = vmul.f32 %v1399_v1, %v2335_v4 }
 0x162   :  { %v984_v46 = vadd.f32 %v679_v42, %v536_v51  ;;  %v983_v29 = vadd.f32 %v674_v45, %v535_v24  ;;  %v1191_v30 = vsel %vm1063_vm1, %v999_v22, %v1127_v8  ;;  %v1192_v32 = vsel %vm1064_vm0, %v1000_v49, %v1128_v3  ;;  %v1540_v3 = vld [vmem:[%s2308_s1 + $0x80] sm:$0xff]  }
 0x163   :  { %v1250_v9 = vpack.c.bf16 %v1192_v32, %v1191_v30  ;;  %v1495_v8 = vunpack.c.l.bf16 %v1548_v20  ;;  %v1464_v32 = vunpack.c.h.bf16 %v1540_v3  ;;  %v582_v17 = vmul.f32 %v1496_v37, %v2336_v39 }
 0x164   :  { %vm1048_vm2 = vcmp.gt.f32.partialorder %v984_v46, 0.0  ;;  %v1112_v25 = vmul.f32 0.2, %v984_v46  ;;  %vm1047_vm3 = vcmp.gt.f32.partialorder %v983_v29, 0.0  ;;  %v1111_v10 = vmul.f32 0.2, %v983_v29 }
 0x165   :  { %v919_v56 = vpop.permute.xlu1 %918  ;;  %v914_v14 = vpop.permute.xlu0 %913  ;;  %1568 = vmatprep.subr.bf16.mxu0 %v1250_v9  ;;  %v1463_v48 = vunpack.c.l.bf16 %v1540_v3 }
 0x166   :  { %v1032_v26 = vadd.f32 %v919_v56, %v584_v18  ;;  %v1031_v61 = vadd.f32 %v914_v14, %v583_v34  ;;  %v1175_v2 = vsel %vm1047_vm3, %v983_v29, %v1111_v10  ;;  %v1176_v15 = vsel %vm1048_vm2, %v984_v46, %v1112_v25  ;;  %v2337_v34 = vld [vmem:[#allocation13_spill] sm:$0xff] }
 0x167   :  { %v1242_v40 = vpack.c.bf16 %v1176_v15, %v1175_v2  ;;  %v581_v9 = vmul.f32 %v1495_v8, %v2337_v34  ;;  %v2338_v2 = vld [vmem:[#allocation8_spill] sm:$0xff] }
 0x168   :  { %vm1096_vm4 = vcmp.gt.f32.partialorder %v1032_v26, 0.0  ;;  %v1160_v47 = vmul.f32 0.2, %v1032_v26  ;;  %vm1095_vm5 = vcmp.gt.f32.partialorder %v1031_v61, 0.0  ;;  %v1159_v53 = vmul.f32 0.2, %v1031_v61 }
 0x169   :  { %v839_v62 = vpop.permute.xlu1 %838  ;;  %v834_v54 = vpop.permute.xlu0 %833  ;;  %1569 = vmatpush3.bf16.msra.mxu0 %v1242_v40  ;;  %v566_v15 = vmul.f32 %v1464_v32, %v2338_v2 }
 0x16a   :  { %v1016_v7 = vadd.f32 %v839_v62, %v568_v44  ;;  %v1015_v55 = vadd.f32 %v834_v54, %v567_v63  ;;  %v1223_v6 = vsel %vm1095_vm5, %v1031_v61, %v1159_v53  ;;  %v1224_v35 = vsel %vm1096_vm4, %v1032_v26, %v1160_v47  ;;  %v2339_v44 = vld [vmem:[#allocation9_spill] sm:$0xff]  ;;  %v1603_v47 = vld [vmem:[%s2309_s0] ss:$16 sps:$4 sm:$0xff]  }
 0x16b   :  { %v1266_v23 = vpack.c.bf16 %v1224_v35, %v1223_v6  ;;  %v565_v12 = vmul.f32 %v1463_v48, %v2339_v44 }
 0x16c   :  { %vm1080_vm6 = vcmp.gt.f32.partialorder %v1016_v7, 0.0  ;;  %v1144_v57 = vmul.f32 0.2, %v1016_v7  ;;  %vm1079_vm7 = vcmp.gt.f32.partialorder %v1015_v55, 0.0  ;;  %v1143_v58 = vmul.f32 0.2, %v1015_v55 }
 0x16d   :  { %v749_v27 = vpop.permute.xlu1 %748  ;;  %v744_v28 = vpop.permute.xlu0 %743  ;;  %1590 = vmatprep.subr.bf16.mxu1 %v1266_v23 }
 0x16e   :  { %v998_v59 = vadd.f32 %v749_v27, %v550_v5  ;;  %v997_v21 = vadd.f32 %v744_v28, %v549_v19  ;;  %v1207_v49 = vsel %vm1079_vm7, %v1015_v55, %v1143_v58  ;;  %v1208_v22 = vsel %vm1080_vm6, %v1016_v7, %v1144_v57 }
 0x16f   :  { %v1258_v24 = vpack.c.bf16 %v1208_v22, %v1207_v49 }
 0x170   :  { %vm1062_vm8 = vcmp.gt.f32.partialorder %v998_v59, 0.0  ;;  %v1126_v38 = vmul.f32 0.2, %v998_v59  ;;  %vm1061_vm9 = vcmp.gt.f32.partialorder %v997_v21, 0.0  ;;  %v1125_v51 = vmul.f32 0.2, %v997_v21 }
 0x171   :  { %v669_v41 = vpop.permute.xlu1 %668  ;;  %1591 = vmatpush3.bf16.msra.mxu1 %v1258_v24 }
 0x172   :  { %v982_v42 = vadd.f32 %v669_v41, %v534_v60  ;;  %v664_v45 = vpop.permute.xlu0 %663  ;;  %v1189_v31 = vsel %vm1061_vm9, %v997_v21, %v1125_v51  ;;  %v1190_v46 = vsel %vm1062_vm8, %v998_v59, %v1126_v38 }
 0x173   :  { %v981_v29 = vadd.f32 %v664_v45, %v533_v52  ;;  %v1249_v30 = vpack.c.bf16 %v1190_v46, %v1189_v31 }
 0x174   :  { %vm1046_vm10 = vcmp.gt.f32.partialorder %v982_v42, 0.0  ;;  %v1110_v18 = vmul.f32 0.2, %v982_v42 }
 0x175   :  { %vm1045_vm11 = vcmp.gt.f32.partialorder %v981_v29, 0.0  ;;  %v1109_v25 = vmul.f32 0.2, %v981_v29  ;;  %v909_v10 = vpop.permute.xlu1 %908  ;;  %1570 = vmatprep.subr.bf16.mxu0 %v1249_v30 }
 0x176   :  { %v1030_v13 = vadd.f32 %v909_v10, %v582_v17  ;;  %v904_v56 = vpop.permute.xlu0 %903  ;;  %v1174_v14 = vsel %vm1046_vm10, %v982_v42, %v1110_v18 }
 0x177   :  { %v1029_v26 = vadd.f32 %v904_v56, %v581_v9  ;;  %v1173_v61 = vsel %vm1045_vm11, %v981_v29, %v1109_v25 }
 0x178   :  { %vm1094_vm12 = vcmp.gt.f32.partialorder %v1030_v13, 0.0  ;;  %v1158_v43 = vmul.f32 0.2, %v1030_v13  ;;  %v1241_v16 = vpack.c.bf16 %v1174_v14, %v1173_v61 }
 0x179   :  { %vm1093_vm13 = vcmp.gt.f32.partialorder %v1029_v26, 0.0  ;;  %v1157_v63 = vmul.f32 0.2, %v1029_v26  ;;  %v829_v40 = vpop.permute.xlu1 %828 }
 0x17a   :  { %v1014_v53 = vadd.f32 %v829_v40, %v566_v15  ;;  %v824_v62 = vpop.permute.xlu0 %823  ;;  %1571 = vmatpush3.bf16.msra.mxu0 %v1241_v16  ;;  %v1222_v54 = vsel %vm1094_vm12, %v1030_v13, %v1158_v43 }
 0x17b   :  { %v1013_v0 = vadd.f32 %v824_v62, %v565_v12  ;;  %v1221_v7 = vsel %vm1093_vm13, %v1029_v26, %v1157_v63 }
 0x17c   :  { %vm1078_vm14 = vcmp.gt.f32.partialorder %v1014_v53, 0.0  ;;  %v1142_v55 = vmul.f32 0.2, %v1014_v53  ;;  %v1265_v6 = vpack.c.bf16 %v1222_v54, %v1221_v7 }
 0x17d   :  { %vm1077_vm15 = vcmp.gt.f32.partialorder %v1013_v0, 0.0  ;;  %v1141_v35 = vmul.f32 0.2, %v1013_v0  ;;  %1338 = vmatmul.mubr.bf16.vlgmr.msra.gmra.mxu0 %v1603_v47  ;;  %v1283_v60 = vpop.permute.xlu1 %1282 }
 0x17e   :  { %1592 = vmatprep.subr.bf16.mxu1 %v1265_v6  ;;  %v1206_v33 = vsel %vm1078_vm14, %v1014_v53, %v1142_v55  ;;  %v1278_v27 = vpop.permute.xlu0 %1277 }
 0x17f   :  { %v1205_v36 = vsel %vm1077_vm15, %v1013_v0, %v1141_v35 }
 0x180   :  { %v1257_v5 = vpack.c.bf16 %v1206_v33, %v1205_v36 }
 0x182   :  { %1593 = vmatpush3.bf16.msra.mxu1 %v1257_v5 }
 0x185   :  { %1379 = vmatmul.mubr.bf16.vlgmr.msra.gmra.mxu1 %v1606_v11 }
 0x23d   :  { %v1572_v19 = vpop.f32.mrf.mxu0 }
 0x23f   :  { %v1573_v20 = vpop.f32.mrf.mxu0 }
 0x240   :  { %v1574_v57 = vadd.f32 %v1573_v20, %v1572_v19 }
 0x241   :  { %v1575_v23 = vpop.f32.mrf.mxu0 }
 0x242   :  { %v1340_v59 = vadd.f32 %v1574_v57, %v1278_v27 }
 0x243   :  { %v1576_v58 = vpop.f32.mrf.mxu0 }
 0x244   :  { %v1577_v21 = vadd.f32 %v1576_v58, %v1575_v23 }
 0x245   :  { %v1594_v1 = vpop.f32.mrf.mxu1 }
 0x246   :  { %v1343_v24 = vadd.f32 %v1577_v21, %v1283_v60 }
 0x247   :  { %v1595_v28 = vpop.f32.mrf.mxu1 }
 0x248   :  { %v1596_v49 = vadd.f32 %v1595_v28, %v1594_v1 }
 0x249   :  { %v1597_v22 = vpop.f32.mrf.mxu1 }
 0x24a   :  { %v1381_v50 = vadd.f32 %v1596_v49, %v1340_v59 }
 0x24b   :  { %v1598_v37 = vpop.f32.mrf.mxu1 }
 0x24c   :  { %1387 = vst [vmem:[%s2311_s5] sm:$0xff] %v1381_v50  ;;  %v1599_v38 = vadd.f32 %v1598_v37, %v1597_v22 }
 0x24e   :  { %v1384_v51 = vadd.f32 %v1599_v38, %v1343_v24 }
 0x250   :  { %1388 = vst [vmem:[%s2311_s5 + $0x8] sm:$0xff] %v1384_v51 }

</bundles_post_ra>
